<compile_context>
chip_gen: v7x
topology: tpu7x:2x2x1
jax: 0.10.0
libtpu: 0.0.40
codegen_flags: <defaults>
</compile_context>

<pallas_src>
import jax
import jax.numpy as jnp
from jax.experimental import pallas as pl
from jax.experimental.pallas import tpu as pltpu


def _round_up(x, m):
    return ((x + m - 1) // m) * m


def _leaky_relu(v, negative_slope=0.2):
    return jnp.where(v > 0, v, negative_slope * v)


def mlp_kernel(
    x_ref,
    w15_ref, b15_ref,      # fused [W1 | W5x] (Cin, 2H), [b1 | b5] (1, 2H)
    w2_ref, b2_ref,
    w4_ref, b4_ref,
    w5h_ref,               # x4-part of conv5 weight (H, H)
    w6_ref, b6_ref,
    w8_ref, b8_ref,        # padded to 128 output lanes
    out_ref,               # (TM, 128) lane-dense output tile
):
    hsize = w2_ref.shape[0]
    cdt = w2_ref.dtype      # MXU input dtype (f32 or bf16); accumulation is f32

    def dot(a, w_ref):
        return jnp.dot(a.astype(cdt), w_ref[...],
                       preferred_element_type=jnp.float32)

    x = x_ref[...]

    # Fused K=Cin matmul: [x @ W1 | x @ W5x] + [b1 | b5]  (single MXU pass)
    h15 = dot(x, w15_ref) + b15_ref[...]
    x1 = _leaky_relu(h15[:, :hsize])
    x5_part = h15[:, hsize:]               # x-contribution to conv5 (b5 included)

    x2 = _leaky_relu(dot(x1, w2_ref) + b2_ref[...])
    x4 = _leaky_relu(dot(x2, w4_ref) + b4_ref[...])
    x5 = _leaky_relu(x5_part + dot(x4, w5h_ref))
    x6 = _leaky_relu(dot(x5, w6_ref) + b6_ref[...])
    out_ref[...] = dot(x6, w8_ref) + b8_ref[...]   # no activation on conv8


def init_params(key, input_dim=73, hsize=256, cls=2, dtype=jnp.float32):
    """Deterministic synthetic parameters.

    Weights are stored as (C_in, C_out) so the kernel computes x @ W + b,
    which equals PyTorch's Conv1d(k=1) with weight[o, c] = W[c, o].
    """
    keys = jax.random.split(key, 12)

    def w(k, cin, cout):
        scale = 1.0 / jnp.sqrt(jnp.float32(cin))
        return jax.random.uniform(k, (cin, cout), dtype, -1.0, 1.0) * scale

    def b(k, cout):
        return jax.random.uniform(k, (1, cout), dtype, -0.1, 0.1)

    return {
        "w1": w(keys[0], input_dim, hsize),         "b1": b(keys[1], hsize),
        "w2": w(keys[2], hsize, hsize),             "b2": b(keys[3], hsize),
        "w4": w(keys[4], hsize, hsize),             "b4": b(keys[5], hsize),
        "w5": w(keys[6], hsize + input_dim, hsize), "b5": b(keys[7], hsize),
        "w6": w(keys[8], hsize, hsize),             "b6": b(keys[9], hsize),
        "w8": w(keys[10], hsize, cls),              "b8": b(keys[11], cls),
    }


def mlp_forward(x_ncl, params, *, compute_dtype=jnp.float32, tm=512):
    """x_ncl: (N, C_in, L) f32 -> (N, cls, L) f32 (PyTorch NCL layout).

    compute_dtype: MXU input dtype. Use jnp.bfloat16 on v6e/v7x for ~2x MXU
    throughput (accumulation and elementwise stay f32).
    """
    n, cin, length = x_ncl.shape
    hsize = params["w1"].shape[1]
    cls = params["w8"].shape[1]
    m = n * length

    # NCL -> (M, C) rows
    x_rows = jnp.transpose(x_ncl, (0, 2, 1)).reshape(m, cin)

    # Row tile: divisible by 8 (sublane), capped at `tm`; pad M to a multiple.
    tm_eff = min(tm, _round_up(m, 8))
    m_pad = _round_up(m, tm_eff)
    if m_pad != m:
        x_rows = jnp.pad(x_rows, ((0, m_pad - m), (0, 0)))

    # Lane-dense output: pad cls up to 128 so stores are unmasked full vst.
    cls_pad = _round_up(cls, 128)

    cdt = compute_dtype
    # Fuse the two K=Cin matmuls: [W1 | W5x] and [b1 | b5].
    w15 = jnp.concatenate([params["w1"], params["w5"][:cin, :]], axis=1).astype(cdt)
    b15 = jnp.concatenate([params["b1"], params["b5"]], axis=1).astype(jnp.float32)
    w5h = params["w5"][cin:, :].astype(cdt)
    w2 = params["w2"].astype(cdt)
    w4 = params["w4"].astype(cdt)
    w6 = params["w6"].astype(cdt)
    w8p = jnp.pad(params["w8"], ((0, 0), (0, cls_pad - cls))).astype(cdt)
    b2 = params["b2"].astype(jnp.float32)
    b4 = params["b4"].astype(jnp.float32)
    b6 = params["b6"].astype(jnp.float32)
    b8p = jnp.pad(params["b8"], ((0, 0), (0, cls_pad - cls))).astype(jnp.float32)

    grid = (pl.cdiv(m_pad, tm_eff),)
    row_in_spec = pl.BlockSpec((tm_eff, cin), lambda i: (i, 0))
    row_out_spec = pl.BlockSpec((tm_eff, cls_pad), lambda i: (i, 0))

    def const_spec(arr):
        # Full-array block, same block every iteration -> stays resident in VMEM.
        return pl.BlockSpec(arr.shape, lambda i: (0, 0))

    out_rows = pl.pallas_call(
        mlp_kernel,
        out_shape=jax.ShapeDtypeStruct((m_pad, cls_pad), jnp.float32),
        grid=grid,
        in_specs=[
            row_in_spec,
            const_spec(w15), const_spec(b15),
            const_spec(w2), const_spec(b2),
            const_spec(w4), const_spec(b4),
            const_spec(w5h),
            const_spec(w6), const_spec(b6),
            const_spec(w8p), const_spec(b8p),
        ],
        out_specs=row_out_spec,
        compiler_params=pltpu.CompilerParams(
            dimension_semantics=("parallel",),          # megacore on v7x
            vmem_limit_bytes=32 * 1024 * 1024,          # raises v5e 16 MiB default
        ),
    )(x_rows, w15, b15, w2, b2, w4, b4, w5h, w6, b6, w8p, b8p)

    # Strip row/lane padding, (M, cls) -> (N, cls, L)
    out_rows = out_rows[:m, :cls]
    return jnp.transpose(out_rows.reshape(n, length, cls), (0, 2, 1))


def mlp_reference(x_ncl, params):
    """Pure-JAX reference mirroring the PyTorch forward."""
    def conv1x1(v, w, b):  # v: (N, Cin, L), w: (Cin, Cout), b: (1, Cout)
        return jnp.einsum("ncl,co->nol", v, w) + b.reshape(1, -1, 1)

    act = lambda v: jnp.where(v > 0, v, 0.2 * v)
    x1 = act(conv1x1(x_ncl, params["w1"], params["b1"]))
    x2 = act(conv1x1(x1, params["w2"], params["b2"]))
    x4 = act(conv1x1(x2, params["w4"], params["b4"]))
    x5 = act(conv1x1(jnp.concatenate([x_ncl, x4], axis=1), params["w5"], params["b5"]))
    x6 = act(conv1x1(x5, params["w6"], params["b6"]))
    return conv1x1(x6, params["w8"], params["b8"])


if __name__ == "__main__":
    INPUT_DIM, HSIZE, CLS = 73, 256, 2

    key = jax.random.PRNGKey(0)
    kx1, kx2, kp = jax.random.split(key, 3)
    params = init_params(kp, INPUT_DIM, HSIZE, CLS)

    # Case 1: tiny batch/length (single grid step), f32 MXU inputs, tight tol.
    x_small = jax.random.normal(kx1, (2, INPUT_DIM, 8), jnp.float32)
    out_small = jax.block_until_ready(mlp_forward(x_small, params))
    ref_small = mlp_reference(x_small, params)
    assert out_small.shape == (2, CLS, 8), out_small.shape
    assert jnp.allclose(out_small, ref_small, atol=1e-4, rtol=1e-4), "f32 small mismatch"

    # Case 2: multi-tile grid with row padding (M=600 -> tiles of 512), f32.
    x_big = jax.random.normal(kx2, (2, INPUT_DIM, 300), jnp.float32)
    out_big = jax.block_until_ready(mlp_forward(x_big, params))
    ref_big = mlp_reference(x_big, params)
    assert out_big.shape == (2, CLS, 300), out_big.shape
    assert jnp.allclose(out_big, ref_big, atol=1e-4, rtol=1e-4), "f32 multi-tile mismatch"

    # Case 3: bf16 MXU inputs (v6e/v7x fast path), f32 accumulate -> loose tol.
    out_bf16 = jax.block_until_ready(
        mlp_forward(x_big, params, compute_dtype=jnp.bfloat16))
    assert jnp.allclose(out_bf16, ref_big, atol=5e-2, rtol=5e-2), "bf16 mismatch"

    print("KERNEL_OK")
</pallas_src>

<mosaic_0001>
module attributes {stable_mosaic.version = 11 : i64} {
  func.func @mlp_kernel(%arg0: i32, %arg1: memref<16x73xf32, #tpu.memory_space<vmem>>, %arg2: memref<73x512xf32, #tpu.memory_space<vmem>>, %arg3: memref<1x512xf32, #tpu.memory_space<vmem>>, %arg4: memref<256x256xf32, #tpu.memory_space<vmem>>, %arg5: memref<1x256xf32, #tpu.memory_space<vmem>>, %arg6: memref<256x256xf32, #tpu.memory_space<vmem>>, %arg7: memref<1x256xf32, #tpu.memory_space<vmem>>, %arg8: memref<256x256xf32, #tpu.memory_space<vmem>>, %arg9: memref<256x256xf32, #tpu.memory_space<vmem>>, %arg10: memref<1x256xf32, #tpu.memory_space<vmem>>, %arg11: memref<256x128xf32, #tpu.memory_space<vmem>>, %arg12: memref<1x128xf32, #tpu.memory_space<vmem>>, %arg13: memref<16x128xf32, #tpu.memory_space<vmem>>) attributes {dimension_semantics = [#tpu.dimension_semantics<parallel>], iteration_bounds = array<i64: 1>, scalar_prefetch = 0 : i64, scratch_operands = 0 : i64, tpu.core_type = #tpu.core_type<tc>, window_params = [{transform_indices = @transform_0, window_bounds = array<i64: 16, 73>}, {pipeline_mode = #tpu.pipeline_mode<synchronous>, transform_indices = @transform_1, window_bounds = array<i64: 73, 512>}, {pipeline_mode = #tpu.pipeline_mode<synchronous>, transform_indices = @transform_2, window_bounds = array<i64: 1, 512>}, {pipeline_mode = #tpu.pipeline_mode<synchronous>, transform_indices = @transform_3, window_bounds = array<i64: 256, 256>}, {pipeline_mode = #tpu.pipeline_mode<synchronous>, transform_indices = @transform_4, window_bounds = array<i64: 1, 256>}, {pipeline_mode = #tpu.pipeline_mode<synchronous>, transform_indices = @transform_5, window_bounds = array<i64: 256, 256>}, {pipeline_mode = #tpu.pipeline_mode<synchronous>, transform_indices = @transform_6, window_bounds = array<i64: 1, 256>}, {pipeline_mode = #tpu.pipeline_mode<synchronous>, transform_indices = @transform_7, window_bounds = array<i64: 256, 256>}, {pipeline_mode = #tpu.pipeline_mode<synchronous>, transform_indices = @transform_8, window_bounds = array<i64: 256, 256>}, {pipeline_mode = #tpu.pipeline_mode<synchronous>, transform_indices = @transform_9, window_bounds = array<i64: 1, 256>}, {pipeline_mode = #tpu.pipeline_mode<synchronous>, transform_indices = @transform_10, window_bounds = array<i64: 256, 128>}, {pipeline_mode = #tpu.pipeline_mode<synchronous>, transform_indices = @transform_11, window_bounds = array<i64: 1, 128>}, {transform_indices = @transform_12, window_bounds = array<i64: 16, 128>}]} {
    %c0 = arith.constant 0 : index
    %c0_0 = arith.constant 0 : index
    %0 = vector.load %arg1[%c0, %c0_0] : memref<16x73xf32, #tpu.memory_space<vmem>>, vector<16x73xf32>
    %c0_1 = arith.constant 0 : index
    %c0_2 = arith.constant 0 : index
    %1 = vector.load %arg2[%c0_1, %c0_2] : memref<73x512xf32, #tpu.memory_space<vmem>>, vector<73x512xf32>
    %cst = arith.constant dense<0.000000e+00> : vector<16x512xf32>
    %2 = tpu.matmul %0, %1, %cst {dimension_numbers = #tpu.dot_dimension_numbers<[1], [0], [0], [1], [0, 0, 1, 1], [], []>} : vector<16x73xf32>, vector<73x512xf32>, vector<16x512xf32> -> vector<16x512xf32>
    %c0_3 = arith.constant 0 : index
    %c0_4 = arith.constant 0 : index
    %3 = vector.load %arg3[%c0_3, %c0_4] : memref<1x512xf32, #tpu.memory_space<vmem>>, vector<1x512xf32>
    %4 = vector.broadcast %3 : vector<1x512xf32> to vector<16x512xf32>
    %5 = arith.addf %2, %4 : vector<16x512xf32>
    %6 = vector.extract_strided_slice %5 {offsets = [0, 0], sizes = [16, 256], strides = [1, 1]} : vector<16x512xf32> to vector<16x256xf32>
    %cst_5 = arith.constant 0.000000e+00 : f32
    %7 = vector.broadcast %cst_5 : f32 to vector<16x256xf32>
    %8 = arith.cmpf ogt, %6, %7 : vector<16x256xf32>
    %cst_6 = arith.constant 2.000000e-01 : f32
    %9 = vector.broadcast %cst_6 : f32 to vector<16x256xf32>
    %10 = arith.mulf %9, %6 : vector<16x256xf32>
    %11 = arith.select %8, %6, %10 : vector<16x256xi1>, vector<16x256xf32>
    %12 = vector.extract_strided_slice %5 {offsets = [0, 256], sizes = [16, 256], strides = [1, 1]} : vector<16x512xf32> to vector<16x256xf32>
    %c0_7 = arith.constant 0 : index
    %c0_8 = arith.constant 0 : index
    %13 = vector.load %arg4[%c0_7, %c0_8] : memref<256x256xf32, #tpu.memory_space<vmem>>, vector<256x256xf32>
    %cst_9 = arith.constant dense<0.000000e+00> : vector<16x256xf32>
    %14 = tpu.matmul %11, %13, %cst_9 {dimension_numbers = #tpu.dot_dimension_numbers<[1], [0], [0], [1], [0, 0, 1, 1], [], []>} : vector<16x256xf32>, vector<256x256xf32>, vector<16x256xf32> -> vector<16x256xf32>
    %c0_10 = arith.constant 0 : index
    %c0_11 = arith.constant 0 : index
    %15 = vector.load %arg5[%c0_10, %c0_11] : memref<1x256xf32, #tpu.memory_space<vmem>>, vector<1x256xf32>
    %16 = vector.broadcast %15 : vector<1x256xf32> to vector<16x256xf32>
    %17 = arith.addf %14, %16 : vector<16x256xf32>
    %cst_12 = arith.constant 0.000000e+00 : f32
    %18 = vector.broadcast %cst_12 : f32 to vector<16x256xf32>
    %19 = arith.cmpf ogt, %17, %18 : vector<16x256xf32>
    %cst_13 = arith.constant 2.000000e-01 : f32
    %20 = vector.broadcast %cst_13 : f32 to vector<16x256xf32>
    %21 = arith.mulf %20, %17 : vector<16x256xf32>
    %22 = arith.select %19, %17, %21 : vector<16x256xi1>, vector<16x256xf32>
    %c0_14 = arith.constant 0 : index
    %c0_15 = arith.constant 0 : index
    %23 = vector.load %arg6[%c0_14, %c0_15] : memref<256x256xf32, #tpu.memory_space<vmem>>, vector<256x256xf32>
    %cst_16 = arith.constant dense<0.000000e+00> : vector<16x256xf32>
    %24 = tpu.matmul %22, %23, %cst_16 {dimension_numbers = #tpu.dot_dimension_numbers<[1], [0], [0], [1], [0, 0, 1, 1], [], []>} : vector<16x256xf32>, vector<256x256xf32>, vector<16x256xf32> -> vector<16x256xf32>
    %c0_17 = arith.constant 0 : index
    %c0_18 = arith.constant 0 : index
    %25 = vector.load %arg7[%c0_17, %c0_18] : memref<1x256xf32, #tpu.memory_space<vmem>>, vector<1x256xf32>
    %26 = vector.broadcast %25 : vector<1x256xf32> to vector<16x256xf32>
    %27 = arith.addf %24, %26 : vector<16x256xf32>
    %cst_19 = arith.constant 0.000000e+00 : f32
    %28 = vector.broadcast %cst_19 : f32 to vector<16x256xf32>
    %29 = arith.cmpf ogt, %27, %28 : vector<16x256xf32>
    %cst_20 = arith.constant 2.000000e-01 : f32
    %30 = vector.broadcast %cst_20 : f32 to vector<16x256xf32>
    %31 = arith.mulf %30, %27 : vector<16x256xf32>
    %32 = arith.select %29, %27, %31 : vector<16x256xi1>, vector<16x256xf32>
    %c0_21 = arith.constant 0 : index
    %c0_22 = arith.constant 0 : index
    %33 = vector.load %arg8[%c0_21, %c0_22] : memref<256x256xf32, #tpu.memory_space<vmem>>, vector<256x256xf32>
    %cst_23 = arith.constant dense<0.000000e+00> : vector<16x256xf32>
    %34 = tpu.matmul %32, %33, %cst_23 {dimension_numbers = #tpu.dot_dimension_numbers<[1], [0], [0], [1], [0, 0, 1, 1], [], []>} : vector<16x256xf32>, vector<256x256xf32>, vector<16x256xf32> -> vector<16x256xf32>
    %35 = arith.addf %12, %34 : vector<16x256xf32>
    %cst_24 = arith.constant 0.000000e+00 : f32
    %36 = vector.broadcast %cst_24 : f32 to vector<16x256xf32>
    %37 = arith.cmpf ogt, %35, %36 : vector<16x256xf32>
    %cst_25 = arith.constant 2.000000e-01 : f32
    %38 = vector.broadcast %cst_25 : f32 to vector<16x256xf32>
    %39 = arith.mulf %38, %35 : vector<16x256xf32>
    %40 = arith.select %37, %35, %39 : vector<16x256xi1>, vector<16x256xf32>
    %c0_26 = arith.constant 0 : index
    %c0_27 = arith.constant 0 : index
    %41 = vector.load %arg9[%c0_26, %c0_27] : memref<256x256xf32, #tpu.memory_space<vmem>>, vector<256x256xf32>
    %cst_28 = arith.constant dense<0.000000e+00> : vector<16x256xf32>
    %42 = tpu.matmul %40, %41, %cst_28 {dimension_numbers = #tpu.dot_dimension_numbers<[1], [0], [0], [1], [0, 0, 1, 1], [], []>} : vector<16x256xf32>, vector<256x256xf32>, vector<16x256xf32> -> vector<16x256xf32>
    %c0_29 = arith.constant 0 : index
    %c0_30 = arith.constant 0 : index
    %43 = vector.load %arg10[%c0_29, %c0_30] : memref<1x256xf32, #tpu.memory_space<vmem>>, vector<1x256xf32>
    %44 = vector.broadcast %43 : vector<1x256xf32> to vector<16x256xf32>
    %45 = arith.addf %42, %44 : vector<16x256xf32>
    %cst_31 = arith.constant 0.000000e+00 : f32
    %46 = vector.broadcast %cst_31 : f32 to vector<16x256xf32>
    %47 = arith.cmpf ogt, %45, %46 : vector<16x256xf32>
    %cst_32 = arith.constant 2.000000e-01 : f32
    %48 = vector.broadcast %cst_32 : f32 to vector<16x256xf32>
    %49 = arith.mulf %48, %45 : vector<16x256xf32>
    %50 = arith.select %47, %45, %49 : vector<16x256xi1>, vector<16x256xf32>
    %c0_33 = arith.constant 0 : index
    %c0_34 = arith.constant 0 : index
    %51 = vector.load %arg11[%c0_33, %c0_34] : memref<256x128xf32, #tpu.memory_space<vmem>>, vector<256x128xf32>
    %cst_35 = arith.constant dense<0.000000e+00> : vector<16x128xf32>
    %52 = tpu.matmul %50, %51, %cst_35 {dimension_numbers = #tpu.dot_dimension_numbers<[1], [0], [0], [1], [0, 0, 1, 1], [], []>} : vector<16x256xf32>, vector<256x128xf32>, vector<16x128xf32> -> vector<16x128xf32>
    %c0_36 = arith.constant 0 : index
    %c0_37 = arith.constant 0 : index
    %53 = vector.load %arg12[%c0_36, %c0_37] : memref<1x128xf32, #tpu.memory_space<vmem>>, vector<1x128xf32>
    %54 = vector.broadcast %53 : vector<1x128xf32> to vector<16x128xf32>
    %55 = arith.addf %52, %54 : vector<16x128xf32>
    %c0_38 = arith.constant 0 : index
    %c0_39 = arith.constant 0 : index
    %56 = vector.load %arg13[%c0_38, %c0_39] : memref<16x128xf32, #tpu.memory_space<vmem>>, vector<16x128xf32>
    tpu.vector_store %arg13[%c0_38, %c0_39], %55 {strides = array<i32>} : memref<16x128xf32, #tpu.memory_space<vmem>>, vector<16x128xf32>,
    return
  }
  func.func @transform_0(%arg0: i32) -> (i32, i32) {
    %c0_i32 = arith.constant 0 : i32
    %c0_i32_0 = arith.constant 0 : i32
    return %arg0, %c0_i32 : i32, i32
  }
  func.func @transform_1(%arg0: i32) -> (i32, i32) {
    %c0_i32 = arith.constant 0 : i32
    %c0_i32_0 = arith.constant 0 : i32
    %c0_i32_1 = arith.constant 0 : i32
    return %c0_i32, %c0_i32_0 : i32, i32
  }
  func.func @transform_2(%arg0: i32) -> (i32, i32) {
    %c0_i32 = arith.constant 0 : i32
    %c0_i32_0 = arith.constant 0 : i32
    %c0_i32_1 = arith.constant 0 : i32
    return %c0_i32, %c0_i32_0 : i32, i32
  }
  func.func @transform_3(%arg0: i32) -> (i32, i32) {
    %c0_i32 = arith.constant 0 : i32
    %c0_i32_0 = arith.constant 0 : i32
    %c0_i32_1 = arith.constant 0 : i32
    return %c0_i32, %c0_i32_0 : i32, i32
  }
  func.func @transform_4(%arg0: i32) -> (i32, i32) {
    %c0_i32 = arith.constant 0 : i32
    %c0_i32_0 = arith.constant 0 : i32
    %c0_i32_1 = arith.constant 0 : i32
    return %c0_i32, %c0_i32_0 : i32, i32
  }
  func.func @transform_5(%arg0: i32) -> (i32, i32) {
    %c0_i32 = arith.constant 0 : i32
    %c0_i32_0 = arith.constant 0 : i32
    %c0_i32_1 = arith.constant 0 : i32
    return %c0_i32, %c0_i32_0 : i32, i32
  }
  func.func @transform_6(%arg0: i32) -> (i32, i32) {
    %c0_i32 = arith.constant 0 : i32
    %c0_i32_0 = arith.constant 0 : i32
    %c0_i32_1 = arith.constant 0 : i32
    return %c0_i32, %c0_i32_0 : i32, i32
  }
  func.func @transform_7(%arg0: i32) -> (i32, i32) {
    %c0_i32 = arith.constant 0 : i32
    %c0_i32_0 = arith.constant 0 : i32
    %c0_i32_1 = arith.constant 0 : i32
    return %c0_i32, %c0_i32_0 : i32, i32
  }
  func.func @transform_8(%arg0: i32) -> (i32, i32) {
    %c0_i32 = arith.constant 0 : i32
    %c0_i32_0 = arith.constant 0 : i32
    %c0_i32_1 = arith.constant 0 : i32
    return %c0_i32, %c0_i32_0 : i32, i32
  }
  func.func @transform_9(%arg0: i32) -> (i32, i32) {
    %c0_i32 = arith.constant 0 : i32
    %c0_i32_0 = arith.constant 0 : i32
    %c0_i32_1 = arith.constant 0 : i32
    return %c0_i32, %c0_i32_0 : i32, i32
  }
  func.func @transform_10(%arg0: i32) -> (i32, i32) {
    %c0_i32 = arith.constant 0 : i32
    %c0_i32_0 = arith.constant 0 : i32
    %c0_i32_1 = arith.constant 0 : i32
    return %c0_i32, %c0_i32_0 : i32, i32
  }
  func.func @transform_11(%arg0: i32) -> (i32, i32) {
    %c0_i32 = arith.constant 0 : i32
    %c0_i32_0 = arith.constant 0 : i32
    %c0_i32_1 = arith.constant 0 : i32
    return %c0_i32, %c0_i32_0 : i32, i32
  }
  func.func @transform_12(%arg0: i32) -> (i32, i32) {
    %c0_i32 = arith.constant 0 : i32
    %c0_i32_0 = arith.constant 0 : i32
    return %arg0, %c0_i32 : i32, i32
  }
}

</mosaic_0001>

<bundles_post_ra>
// kernel: tpu_custom_call.1
= control target key start
LH: loop header
LB: loop body
LE: loop exit
PB: predicated region body
PF: predicated region fallthrough
CT: control target
= control target key end

     0   :  { %17 = vsyncpa [#allocation3], 0  ;;  %s2037_s0 = inlined_call_operand.hbm [shape: f32[16,73], index: 0, kind: input, shape index: {}]   ;;  %s2038_s1 = inlined_call_operand.hbm [shape: f32[73,512], index: 1, kind: input, shape index: {}]   ;;  %s2039_s2 = inlined_call_operand.vmem [shape: f32[1,512], index: 2, kind: input, shape index: {}]   ;;  %s2040_s3 = inlined_call_operand.hbm [shape: f32[256,256], index: 3, kind: input, shape index: {}]   ;;  %s2041_s4 = inlined_call_operand.vmem [shape: f32[1,256], index: 4, kind: input, shape index: {}]   ;;  %s2042_s5 = inlined_call_operand.hbm [shape: f32[256,256], index: 5, kind: input, shape index: {}]   ;;  %s2043_s6 = inlined_call_operand.vmem [shape: f32[1,256], index: 6, kind: input, shape index: {}]   ;;  %s2044_s7 = inlined_call_operand.hbm [shape: f32[256,256], index: 7, kind: input, shape index: {}]   ;;  %s2045_s8 = inlined_call_operand.hbm [shape: f32[256,256], index: 8, kind: input, shape index: {}]   ;;  %s2046_s9 = inlined_call_operand.vmem [shape: f32[1,256], index: 9, kind: input, shape index: {}]   ;;  %s2047_s10 = inlined_call_operand.hbm [shape: f32[256,128], index: 10, kind: input, shape index: {}]   ;;  %s2048_s11 = inlined_call_operand.vmem [shape: f32[1,128], index: 11, kind: input, shape index: {}]   ;;  %s2049_s12 = inlined_call_operand.hbm [shape: f32[16,128], index: 12, kind: output, shape index: {}]  }
   0x1   :  { %18 = vsyncpa [#allocation6], 0 }
   0x2   :  { %19 = vsyncpa [#allocation9], 0 }
   0x3   :  { %20 = vsyncpa [#allocation12], 0 }
   0x4   :  { %21 = vsyncpa [#allocation4], 0  ;;  %s1764_s21 = smov [#allocation5]   ;;  %s1578_s25 = scalar_lea.hbm %s2038_s1, 5120 }
   0x5   :  { %s39_s22 = sshll.u32 %s1764_s21, 4  ;;  %p1579_p0 = scmp.ne.s32.totalorder %s2038_s1, %s1578_s25  ;;  %s40_s22 = int_to_ptr.vmem [resolvable:$true] %s39_s22 }
   0x6   :  { %p1582_p1 = scmp.lt.u32.totalorder %s1578_s25, %s2038_s1 }
   0x8   :  { %p1584_p2 = pnand %p1582_p1, %p1579_p0 }
   0xa   :  { %1587 = shalt.err (!%p1584_p2)
}
   0xb   :  { %s1588_s30 = scalar_lea.vmem %s40_s22, 5120  ;;  %p1593_p4 = scmp.lt.s32.totalorder %s40_s22, %s40_s22 }
   0xc   :  { %p1589_p3 = scmp.ne.s32.totalorder %s40_s22, %s1588_s30  ;;  %p1594_p5 = scmp.lt.s32.totalorder %s1588_s30, %s1588_s30 }
   0xe   :  { %p1595_p6 = por %p1594_p5, %p1593_p4 }
  0x10   :  { %p1596_p7 = pnand %p1595_p6, %p1589_p3 }
  0x12   :  { %1599 = shalt.err (!%p1596_p7)
}
  0x13   :  { %s1765_s13 = smov 512   ;;  %s1766_s14 = smov 32  }
  0x14   :  { %45 = dma.hbm_to_vmem [thread:$0]  %s2038_s1, 5120, %s40_s22, [#allocation6], %s1765_s13, %s1765_s13, %s1766_s14  }
  0x15   :  { %s1767_s17 = smov [#allocation8]   ;;  %s1768_s19 = smov [#allocation11]  }
  0x16   :  { %s67_s18 = sshll.u32 %s1767_s17, 4  ;;  %s93_s20 = sshll.u32 %s1768_s19, 4  ;;  %s68_s18 = int_to_ptr.vmem [resolvable:$true] %s67_s18  ;;  %s94_s20 = int_to_ptr.vmem [resolvable:$true] %s93_s20 }
  0x17   :  { %s1600_s24 = scalar_lea.hbm %s2042_s5, 8192 }
  0x18   :  { %p1601_p8 = scmp.ne.s32.totalorder %s2042_s5, %s1600_s24  ;;  %p1604_p9 = scmp.lt.u32.totalorder %s1600_s24, %s2042_s5 }
  0x1a   :  { %p1606_p10 = pnand %p1604_p9, %p1601_p8 }
  0x1c   :  { %1609 = shalt.err (!%p1606_p10)
}
  0x1d   :  { %s1610_s1 = scalar_lea.vmem %s68_s18, 8192  ;;  %p1615_p12 = scmp.lt.s32.totalorder %s68_s18, %s68_s18 }
  0x1e   :  { %p1611_p11 = scmp.ne.s32.totalorder %s68_s18, %s1610_s1  ;;  %p1616_p13 = scmp.lt.s32.totalorder %s1610_s1, %s1610_s1 }
  0x20   :  { %p1617_p0 = por %p1616_p13, %p1615_p12 }
  0x22   :  { %p1618_p1 = pnand %p1617_p0, %p1611_p11 }
  0x24   :  { %1621 = shalt.err (!%p1618_p1)
}
  0x25   :  { %s1769_s22 = smov 256   ;;  %s1770_s29 = smov 16  }
  0x26   :  { %73 = dma.hbm_to_vmem [thread:$0]  %s2042_s5, 8192, %s68_s18, [#allocation9], %s1769_s22, %s1769_s22, %s1770_s29  }
  0x27   :  { %s1622_s16 = scalar_lea.hbm %s2045_s8, 8192 }
  0x28   :  { %p1623_p2 = scmp.ne.s32.totalorder %s2045_s8, %s1622_s16  ;;  %p1626_p3 = scmp.lt.u32.totalorder %s1622_s16, %s2045_s8 }
  0x2a   :  { %p1628_p4 = pnand %p1626_p3, %p1623_p2 }
  0x2c   :  { %1631 = shalt.err (!%p1628_p4)
}
  0x2d   :  { %s1632_s24 = scalar_lea.vmem %s94_s20, 8192  ;;  %p1637_p6 = scmp.lt.s32.totalorder %s94_s20, %s94_s20 }
  0x2e   :  { %p1633_p5 = scmp.ne.s32.totalorder %s94_s20, %s1632_s24  ;;  %p1638_p7 = scmp.lt.s32.totalorder %s1632_s24, %s1632_s24 }
  0x30   :  { %p1639_p8 = por %p1638_p7, %p1637_p6 }
  0x32   :  { %p1640_p9 = pnand %p1639_p8, %p1633_p5 }
  0x34   :  { %1643 = shalt.err (!%p1640_p9)
}
  0x35   :  { %99 = dma.hbm_to_vmem [thread:$0]  %s2045_s8, 8192, %s94_s20, [#allocation12], %s1769_s22, %s1769_s22, %s1770_s29  }
  0x36   :  { %s1771_s25 = smov [#allocation2]   ;;  %s1644_s1 = scalar_lea.hbm %s2037_s0, 256 }
  0x37   :  { %s27_s26 = sshll.u32 %s1771_s25, 4  ;;  %p1645_p10 = scmp.ne.s32.totalorder %s2037_s0, %s1644_s1  ;;  %s28_s26 = int_to_ptr.vmem [resolvable:$true] %s27_s26 }
  0x38   :  { %p1648_p11 = scmp.lt.u32.totalorder %s1644_s1, %s2037_s0 }
  0x3a   :  { %p1650_p12 = pnand %p1648_p11, %p1645_p10 }
  0x3c   :  { %1653 = shalt.err (!%p1650_p12)
}
  0x3d   :  { %s1654_s16 = scalar_lea.vmem %s28_s26, 256  ;;  %p1659_p0 = scmp.lt.s32.totalorder %s28_s26, %s28_s26 }
  0x3e   :  { %p1655_p13 = scmp.ne.s32.totalorder %s28_s26, %s1654_s16  ;;  %p1660_p1 = scmp.lt.s32.totalorder %s1654_s16, %s1654_s16 }
  0x40   :  { %p1661_p2 = por %p1660_p1, %p1659_p0 }
  0x42   :  { %p1662_p3 = pnand %p1661_p2, %p1655_p13 }
  0x44   :  { %1665 = shalt.err (!%p1662_p3)
}
  0x45   :  { %s1772_s8 = smov 128   ;;  %s1773_s20 = smov 8  }
  0x46   :  { %33 = dma.hbm_to_vmem [thread:$0]  %s2037_s0, 256, %s28_s26, [#allocation3], %s1772_s8, %s1772_s8, %s1773_s20  }
  0x47   :  { %s1774_s21 = smov [#allocation7]   ;;  %s1775_s24 = smov [#allocation10]  }
  0x48   :  { %s53_s23 = sshll.u32 %s1774_s21, 4  ;;  %s81_s5 = sshll.u32 %s1775_s24, 4  ;;  %s54_s23 = int_to_ptr.vmem [resolvable:$true] %s53_s23  ;;  %s1902_s5 = int_to_ptr.vmem [resolvable:$true] %s81_s5 }
  0x49   :  { %s1666_s27 = scalar_lea.hbm %s2040_s3, 8192 }
  0x4a   :  { %p1667_p4 = scmp.ne.s32.totalorder %s2040_s3, %s1666_s27  ;;  %p1670_p5 = scmp.lt.u32.totalorder %s1666_s27, %s2040_s3 }
  0x4c   :  { %p1672_p6 = pnand %p1670_p5, %p1667_p4 }
  0x4e   :  { %1675 = shalt.err (!%p1672_p6)
}
  0x4f   :  { %s1676_s0 = scalar_lea.vmem %s54_s23, 8192  ;;  %p1681_p8 = scmp.lt.s32.totalorder %s54_s23, %s54_s23 }
  0x50   :  { %p1677_p7 = scmp.ne.s32.totalorder %s54_s23, %s1676_s0  ;;  %p1682_p9 = scmp.lt.s32.totalorder %s1676_s0, %s1676_s0 }
  0x52   :  { %p1683_p10 = por %p1682_p9, %p1681_p8 }
  0x54   :  { %p1684_p11 = pnand %p1683_p10, %p1677_p7 }
  0x56   :  { %1687 = shalt.err (!%p1684_p11)
}
  0x57   :  { %59 = dma.hbm_to_vmem [thread:$0]  %s2040_s3, 8192, %s54_s23, [#allocation6], %s1769_s22, %s1769_s22, %s1770_s29  }
  0x58   :  { %s1688_s17 = scalar_lea.hbm %s2044_s7, 8192 }
  0x59   :  { %p1689_p12 = scmp.ne.s32.totalorder %s2044_s7, %s1688_s17  ;;  %p1692_p13 = scmp.lt.u32.totalorder %s1688_s17, %s2044_s7 }
  0x5b   :  { %p1694_p0 = pnand %p1692_p13, %p1689_p12 }
  0x5d   :  { %1697 = shalt.err (!%p1694_p0)
}
  0x5e   :  { %s1698_s25 = scalar_lea.vmem %s1902_s5, 8192  ;;  %p1703_p2 = scmp.lt.s32.totalorder %s1902_s5, %s1902_s5 }
  0x5f   :  { %p1699_p1 = scmp.ne.s32.totalorder %s1902_s5, %s1698_s25  ;;  %p1704_p3 = scmp.lt.s32.totalorder %s1698_s25, %s1698_s25 }
  0x61   :  { %p1705_p4 = por %p1704_p3, %p1703_p2 }
  0x63   :  { %p1706_p5 = pnand %p1705_p4, %p1699_p1 }
  0x65   :  { %1709 = shalt.err (!%p1706_p5)
}
  0x66   :  { %87 = dma.hbm_to_vmem [thread:$0]  %s2044_s7, 8192, %s1902_s5, [#allocation9], %s1769_s22, %s1769_s22, %s1770_s29  }
  0x67   :  { %s1776_s27 = smov [#allocation13]   ;;  %s1710_s13 = scalar_lea.hbm %s2047_s10, 4096 }
  0x68   :  { %s107_s28 = sshll.u32 %s1776_s27, 4  ;;  %p1711_p6 = scmp.ne.s32.totalorder %s2047_s10, %s1710_s13  ;;  %s108_s28 = int_to_ptr.vmem [resolvable:$true] %s107_s28 }
  0x69   :  { %p1714_p7 = scmp.lt.u32.totalorder %s1710_s13, %s2047_s10 }
  0x6b   :  { %p1716_p8 = pnand %p1714_p7, %p1711_p6 }
  0x6d   :  { %1719 = shalt.err (!%p1716_p8)
}
  0x6e   :  { %s1720_s16 = scalar_lea.vmem %s108_s28, 4096  ;;  %p1725_p10 = scmp.lt.s32.totalorder %s108_s28, %s108_s28 }
  0x6f   :  { %p1721_p9 = scmp.ne.s32.totalorder %s108_s28, %s1720_s16  ;;  %p1726_p11 = scmp.lt.s32.totalorder %s1720_s16, %s1720_s16 }
  0x71   :  { %p1727_p12 = por %p1726_p11, %p1725_p10 }
  0x73   :  { %p1728_p13 = pnand %p1727_p12, %p1721_p9 }
  0x75   :  { %1731 = shalt.err (!%p1728_p13)
}
  0x76   :  { %113 = dma.hbm_to_vmem [thread:$0]  %s2047_s10, 4096, %s108_s28, [#allocation12], %s1772_s8, %s1772_s8, %s1773_s20  }
  0x77   :  { %1754 = dma.done.wait [#allocation3], 256  }
  0x78   :  { %1755 = vsyncadd [#allocation3], 4294967040 }
  0x79   :  { %1756 = dma.done.wait [#allocation6], 13312  }
  0x7a   :  { %1757 = vsyncadd [#allocation6], 4294953984 }
  0x7b   :  { %1758 = dma.done.wait [#allocation9], 16384  }
  0x7c   :  { %1759 = vsyncadd [#allocation9], 4294950912 }
  0x7d   :  { %1760 = dma.done.wait [#allocation12], 12288  }
  0x7e   :  { %1761 = vsyncadd [#allocation12], 4294955008  ;;  %v1777_v0 = vmov 0.0   ;;  %v140_v1 = vld [vmem:[#allocation5 + $0x8] sm:$0xff]  ;;  %v139_v3 = vld [vmem:[#allocation5] sm:$0xff]  ;;  %vm208_vm0 = vcmask 1040384  }
  0x7f   :  { %285 = vmatprep.mubr.f32.mxu1 %v1777_v0  ;;  %v144_v2 = vld [vmem:[#allocation5 + $0x28] sm:$0xff]  ;;  %v143_v5 = vld [vmem:[#allocation5 + $0x20] sm:$0xff]  ;;  %v390_v23 = vld [vmem:[#allocation7 + $0x18] sm:$0xff]  ;;  %vm1778_vm1 = vmmov 1   ;;  %vm201_vm3 = vcmask 596992   ;;  %s1779_s24 = smov [#allocation14]  }
  0x80   :  { %v1222_v4 = vpack.c.bf16 %v144_v2, %v140_v1  ;;  %v148_v6 = vld [vmem:[#allocation5 + $0x48] sm:$0xff]  ;;  %v1224_v8 = vpack.c.bf16 %v143_v5, %v139_v3  ;;  %v147_v10 = vld [vmem:[#allocation5 + $0x40] sm:$0xff]  ;;  %v389_v28 = vld [vmem:[#allocation7 + $0x10] sm:$0xff]  ;;  %s1160_s18 = sshll.u32 %s1779_s24, 4  ;;  %s1161_s18 = int_to_ptr.vmem [resolvable:$true] %s1160_s18 }
  0x81   :  { %v152_v7 = vld [vmem:[#allocation5 + $0x68] sm:$0xff]  ;;  %v151_v11 = vld [vmem:[#allocation5 + $0x60] sm:$0xff]  ;;  %v394_v32 = vld [vmem:[#allocation7 + $0x38] sm:$0xff]  ;;  %s1732_s25 = scalar_lea.vmem %s1161_s18, 256  ;;  %p1737_p1 = scmp.lt.s32.totalorder %s1161_s18, %s1161_s18 }
  0x82   :  { %v1226_v9 = vpack.c.bf16 %v152_v7, %v148_v6  ;;  %v156_v12 = vld [vmem:[#allocation5 + $0x88] sm:$0xff]  ;;  %1223 = vmatprep.subr.bf16.mxu1 %v1222_v4  ;;  %v1228_v14 = vpack.c.bf16 %v151_v11, %v147_v10  ;;  %v155_v16 = vld [vmem:[#allocation5 + $0x80] sm:$0xff]  ;;  %v393_v34 = vld [vmem:[#allocation7 + $0x30] sm:$0xff]  ;;  %p1733_p0 = scmp.ne.s32.totalorder %s1161_s18, %s1732_s25  ;;  %p1738_p2 = scmp.lt.s32.totalorder %s1732_s25, %s1732_s25 }
  0x83   :  { %v160_v13 = vld [vmem:[#allocation5 + $0xa8] sm:$0xff]  ;;  %1225 = vmatpush1.bf16.msra.mxu1 %v1224_v8  ;;  %v159_v17 = vld [vmem:[#allocation5 + $0xa0] sm:$0xff]  ;;  %v398_v38 = vld [vmem:[#allocation7 + $0x58] sm:$0xff] }
  0x84   :  { %1227 = vmatprep.subr.bf16.mxu1 %v1226_v9  ;;  %v1230_v15 = vpack.c.bf16 %v160_v13, %v156_v12  ;;  %v164_v18 = vld [vmem:[#allocation5 + $0xc8] sm:$0xff]  ;;  %v163_v20 = vld [vmem:[#allocation5 + $0xc0] sm:$0xff]  ;;  %v1232_v24 = vpack.c.bf16 %v159_v17, %v155_v16  ;;  %v397_v44 = vld [vmem:[#allocation7 + $0x50] sm:$0xff]  ;;  %p1739_p3 = por %p1738_p2, %p1737_p1 }
  0x85   :  { %v168_v19 = vld [vmem:[#allocation5 + $0xe8] sm:$0xff]  ;;  %v167_v21 = vld [vmem:[#allocation5 + $0xe0] sm:$0xff]  ;;  %v402_v48 = vld [vmem:[#allocation7 + $0x78] sm:$0xff] }
  0x86   :  { %v388_v22 = vld [vmem:[#allocation7 + $0x8] sm:$0xff]  ;;  %v387_v27 = vld [vmem:[#allocation7] sm:$0xff]  ;;  %v1234_v30 = vpack.c.bf16 %v168_v19, %v164_v18  ;;  %v1236_v40 = vpack.c.bf16 %v167_v21, %v163_v20  ;;  %vm1956_vm2 = vmpackc.low %vm208_vm0, %vm1778_vm1  ;;  %p1740_p4 = pnand %p1739_p3, %p1733_p0 }
  0x87   :  { %1229 = vmatpush1.bf16.msra.mxu1 %v1228_v14  ;;  %v172_v25 = vld [vmem:[#allocation5 + $0x108] sm:$0xff]  ;;  %v1266_v26 = vpack.c.bf16 %v390_v23, %v388_v22  ;;  %v1268_v31 = vpack.c.bf16 %v389_v28, %v387_v27  ;;  %v391_v33 = vld [vmem:[#allocation7 + $0x20] sm:$0xff]  ;;  %v401_v54 = vld [vmem:[#allocation7 + $0x70] sm:$0xff] }
  0x88   :  { %v392_v29 = vld [vmem:[#allocation7 + $0x28] sm:$0xff]  ;;  %1231 = vmatprep.subr.bf16.mxu1 %v1230_v15  ;;  %v1272_v39 = vpack.c.bf16 %v393_v34, %v391_v33  ;;  %v171_v41 = vld [vmem:[#allocation5 + $0x100] sm:$0xff]  ;;  %v406_v56 = vld [vmem:[#allocation7 + $0x98] sm:$0xff] }
  0x89   :  { %v176_v35 = vld [vmem:[#allocation5 + $0x128] sm:$0x1]  ;;  %1267 = vmatprep.subr.bf16.mxu0 %v1266_v26  ;;  %v1270_v36 = vpack.c.bf16 %v394_v32, %v392_v29  ;;  %v395_v43 = vld [vmem:[#allocation7 + $0x40] sm:$0xff]  ;;  %v1964_v58 = vld [vmem:[#allocation2] sm:$0xff] }
  0x8a   :  { %v396_v37 = vld [vmem:[#allocation7 + $0x48] sm:$0xff]  ;;  %1269 = vmatpush1.bf16.msra.mxu0 %v1268_v31  ;;  %v1238_v45 = vpack.c.bf16 %v176_v35, %v172_v25  ;;  %v175_v46 = vld [vmem:[#allocation5 + $0x120] sm:$0x1]  ;;  %v1276_v50 = vpack.c.bf16 %v397_v44, %v395_v43  ;;  %v405_v61 = vld [vmem:[#allocation7 + $0x90] sm:$0xff] }
  0x8b   :  { %1233 = vmatpush1.bf16.msra.mxu1 %v1232_v24  ;;  %1271 = vmatprep.subr.bf16.mxu0 %v1270_v36  ;;  %v1274_v42 = vpack.c.bf16 %v398_v38, %v396_v37  ;;  %v400_v47 = vld [vmem:[#allocation7 + $0x68] sm:$0xff]  ;;  %v1241_v51 = vpack.c.bf16 %v175_v46, %v171_v41  ;;  %v399_v53 = vld [vmem:[#allocation7 + $0x60] sm:$0xff]  ;;  %v410_v63 = vld [vmem:[#allocation7 + $0xb8] sm:$0xff] }
  0x8c   :  { %1235 = vmatprep.subr.bf16.mxu1 %v1234_v30  ;;  %v1278_v52 = vpack.c.bf16 %v402_v48, %v400_v47  ;;  %v404_v55 = vld [vmem:[#allocation7 + $0x88] sm:$0xff]  ;;  %v1280_v57 = vpack.c.bf16 %v401_v54, %v399_v53  ;;  %v403_v60 = vld [vmem:[#allocation7 + $0x80] sm:$0xff]  ;;  %v1969_v2 = vld [vmem:[#allocation2 + $0x8] sm:$0xff] }
  0x8d   :  { %v1282_v59 = vpack.c.bf16 %v406_v56, %v404_v55  ;;  %v408_v62 = vld [vmem:[#allocation7 + $0xa8] sm:$0xff]  ;;  %v1284_v1 = vpack.c.bf16 %v405_v61, %v403_v60  ;;  %v407_v4 = vld [vmem:[#allocation7 + $0xa0] sm:$0xff]  ;;  %v409_v5 = vld [vmem:[#allocation7 + $0xb0] sm:$0xff] }
  0x8e   :  { %1273 = vmatpush1.bf16.msra.mxu0 %v1272_v39  ;;  %v1286_v3 = vpack.c.bf16 %v410_v63, %v408_v62  ;;  %v412_v6 = vld [vmem:[#allocation7 + $0xc8] sm:$0xff]  ;;  %v414_v7 = vld [vmem:[#allocation7 + $0xd8] sm:$0xff]  ;;  %v1288_v8 = vpack.c.bf16 %v409_v5, %v407_v4  ;;  %v411_v10 = vld [vmem:[#allocation7 + $0xc0] sm:$0xff] }
  0x8f   :  { %1237 = vmatpush1.bf16.msra.mxu1 %v1236_v40  ;;  %1275 = vmatprep.subr.bf16.mxu0 %v1274_v42  ;;  %v1290_v9 = vpack.c.bf16 %v414_v7, %v412_v6  ;;  %v413_v11 = vld [vmem:[#allocation7 + $0xd0] sm:$0xff]  ;;  %v416_v12 = vld [vmem:[#allocation7 + $0xe8] sm:$0xff]  ;;  %v418_v13 = vld [vmem:[#allocation7 + $0xf8] sm:$0xff] }
  0x90   :  { %1240 = vmatprep.subr.msk.bf16.mxu1 %vm1956_vm2, %v1238_v45  ;;  %v1292_v14 = vpack.c.bf16 %v413_v11, %v411_v10  ;;  %v1294_v15 = vpack.c.bf16 %v418_v13, %v416_v12  ;;  %v415_v16 = vld [vmem:[#allocation7 + $0xe0] sm:$0xff]  ;;  %v417_v17 = vld [vmem:[#allocation7 + $0xf0] sm:$0xff]  ;;  %v420_v18 = vld [vmem:[#allocation7 + $0x108] sm:$0xff] }
  0x91   :  { %v422_v19 = vld [vmem:[#allocation7 + $0x118] sm:$0xff]  ;;  %v1296_v20 = vpack.c.bf16 %v417_v17, %v415_v16  ;;  %v419_v22 = vld [vmem:[#allocation7 + $0x100] sm:$0xff]  ;;  %v421_v23 = vld [vmem:[#allocation7 + $0x110] sm:$0xff] }
  0x92   :  { %1277 = vmatpush1.bf16.msra.mxu0 %v1276_v50  ;;  %v1298_v21 = vpack.c.bf16 %v422_v19, %v420_v18  ;;  %v424_v24 = vld [vmem:[#allocation7 + $0x128] sm:$0xff]  ;;  %v426_v25 = vld [vmem:[#allocation7 + $0x138] sm:$0xff]  ;;  %v1300_v26 = vpack.c.bf16 %v421_v23, %v419_v22  ;;  %v423_v28 = vld [vmem:[#allocation7 + $0x120] sm:$0xff] }
  0x93   :  { %1243 = vmatpush1.bf16.msk.msra.mxu1 %vm1956_vm2, %v1241_v51  ;;  %1279 = vmatprep.subr.bf16.mxu0 %v1278_v52  ;;  %v1302_v27 = vpack.c.bf16 %v426_v25, %v424_v24  ;;  %v425_v29 = vld [vmem:[#allocation7 + $0x130] sm:$0xff]  ;;  %v428_v30 = vld [vmem:[#allocation7 + $0x148] sm:$0xff]  ;;  %v430_v31 = vld [vmem:[#allocation7 + $0x158] sm:$0xff] }
  0x94   :  { %v1304_v32 = vpack.c.bf16 %v425_v29, %v423_v28  ;;  %v1306_v33 = vpack.c.bf16 %v430_v31, %v428_v30  ;;  %v427_v34 = vld [vmem:[#allocation7 + $0x140] sm:$0xff]  ;;  %v429_v35 = vld [vmem:[#allocation7 + $0x150] sm:$0xff]  ;;  %v432_v36 = vld [vmem:[#allocation7 + $0x168] sm:$0xff] }
  0x95   :  { %v434_v37 = vld [vmem:[#allocation7 + $0x178] sm:$0xff]  ;;  %v1308_v38 = vpack.c.bf16 %v429_v35, %v427_v34  ;;  %v431_v40 = vld [vmem:[#allocation7 + $0x160] sm:$0xff]  ;;  %v433_v41 = vld [vmem:[#allocation7 + $0x170] sm:$0xff] }
  0x96   :  { %1177 = vmatmul.mubr.msk.f32.vlgmr.msra.gmra.mrb[0].mxu1 %vm201_vm3, %v1964_v58  ;;  %1281 = vmatpush1.bf16.msra.mxu0 %v1280_v57  ;;  %v1310_v39 = vpack.c.bf16 %v434_v37, %v432_v36  ;;  %v436_v42 = vld [vmem:[#allocation7 + $0x188] sm:$0xff]  ;;  %v438_v43 = vld [vmem:[#allocation7 + $0x198] sm:$0xff]  ;;  %v1312_v44 = vpack.c.bf16 %v433_v41, %v431_v40  ;;  %v435_v46 = vld [vmem:[#allocation7 + $0x180] sm:$0xff] }
  0x97   :  { %291 = vmatprep.mubr.f32.mxu1 %v1777_v0  ;;  %1283 = vmatprep.subr.bf16.mxu0 %v1282_v59  ;;  %v1314_v45 = vpack.c.bf16 %v438_v43, %v436_v42  ;;  %v437_v47 = vld [vmem:[#allocation7 + $0x190] sm:$0xff]  ;;  %v440_v48 = vld [vmem:[#allocation7 + $0x1a8] sm:$0xff]  ;;  %v442_v50 = vld [vmem:[#allocation7 + $0x1b8] sm:$0xff] }
  0x98   :  { %v1316_v51 = vpack.c.bf16 %v437_v47, %v435_v46  ;;  %v1318_v52 = vpack.c.bf16 %v442_v50, %v440_v48  ;;  %v439_v53 = vld [vmem:[#allocation7 + $0x1a0] sm:$0xff]  ;;  %v441_v54 = vld [vmem:[#allocation7 + $0x1b0] sm:$0xff]  ;;  %v444_v56 = vld [vmem:[#allocation7 + $0x1c8] sm:$0xff] }
  0x99   :  { %v1320_v55 = vpack.c.bf16 %v441_v54, %v439_v53  ;;  %v446_v57 = vld [vmem:[#allocation7 + $0x1d8] sm:$0xff]  ;;  %v443_v60 = vld [vmem:[#allocation7 + $0x1c0] sm:$0xff]  ;;  %v445_v61 = vld [vmem:[#allocation7 + $0x1d0] sm:$0xff] }
  0x9a   :  { %1178 = vmatmul.mubr.msk.f32.gmra.mrb[2].mxu1 %vm201_vm3, %v1969_v2  ;;  %1285 = vmatpush1.bf16.msra.mxu0 %v1284_v1  ;;  %v1322_v59 = vpack.c.bf16 %v446_v57, %v444_v56  ;;  %v1324_v62 = vpack.c.bf16 %v445_v61, %v443_v60  ;;  %v448_v63 = vld [vmem:[#allocation7 + $0x1e8] sm:$0xff]  ;;  %v450_v1 = vld [vmem:[#allocation7 + $0x1f8] sm:$0xff]  ;;  %v447_v4 = vld [vmem:[#allocation7 + $0x1e0] sm:$0xff] }
  0x9b   :  { %1287 = vmatprep.subr.bf16.mxu0 %v1286_v3  ;;  %362 = vmatprep.mubr.f32.mxu1 %v1777_v0  ;;  %v1326_v3 = vpack.c.bf16 %v450_v1, %v448_v63  ;;  %v449_v5 = vld [vmem:[#allocation7 + $0x1f0] sm:$0xff]  ;;  %v142_v7 = vld [vmem:[#allocation5 + $0x18] sm:$0xff]  ;;  %v553_v36 = vld [vmem:[#allocation8 + $0x8] sm:$0xff] }
  0x9c   :  { %v1328_v6 = vpack.c.bf16 %v449_v5, %v447_v4  ;;  %v145_v11 = vld [vmem:[#allocation5 + $0x30] sm:$0xff]  ;;  %v150_v12 = vld [vmem:[#allocation5 + $0x58] sm:$0xff]  ;;  %v552_v40 = vld [vmem:[#allocation8] sm:$0xff] }
  0x9d   :  { %v154_v13 = vld [vmem:[#allocation5 + $0x78] sm:$0xff]  ;;  %v149_v16 = vld [vmem:[#allocation5 + $0x50] sm:$0xff]  ;;  %v557_v42 = vld [vmem:[#allocation8 + $0x28] sm:$0xff] }
  0x9e   :  { %1289 = vmatpush1.bf16.msra.mxu0 %v1288_v8  ;;  %v146_v8 = vld [vmem:[#allocation5 + $0x38] sm:$0xff]  ;;  %v153_v17 = vld [vmem:[#allocation5 + $0x70] sm:$0xff]  ;;  %v556_v46 = vld [vmem:[#allocation8 + $0x20] sm:$0xff] }
  0x9f   :  { %1291 = vmatprep.subr.bf16.mxu0 %v1290_v9  ;;  %v141_v9 = vld [vmem:[#allocation5 + $0x10] sm:$0xff]  ;;  %v1244_v10 = vpack.c.bf16 %v146_v8, %v142_v7  ;;  %v158_v18 = vld [vmem:[#allocation5 + $0x98] sm:$0xff]  ;;  %v561_v48 = vld [vmem:[#allocation8 + $0x48] sm:$0xff] }
  0xa0   :  { %v162_v19 = vld [vmem:[#allocation5 + $0xb8] sm:$0xff]  ;;  %v157_v22 = vld [vmem:[#allocation5 + $0x90] sm:$0xff]  ;;  %v560_v53 = vld [vmem:[#allocation8 + $0x40] sm:$0xff] }
  0xa1   :  { %1245 = vmatprep.subr.bf16.mxu1 %v1244_v10  ;;  %v161_v23 = vld [vmem:[#allocation5 + $0xb0] sm:$0xff]  ;;  %v166_v24 = vld [vmem:[#allocation5 + $0xd8] sm:$0xff]  ;;  %v565_v49 = vld [vmem:[#allocation8 + $0x68] sm:$0xff] }
  0xa2   :  { %1293 = vmatpush1.bf16.msra.mxu0 %v1292_v14  ;;  %v1246_v14 = vpack.c.bf16 %v145_v11, %v141_v9  ;;  %v170_v25 = vld [vmem:[#allocation5 + $0xf8] sm:$0xff]  ;;  %v165_v28 = vld [vmem:[#allocation5 + $0xd0] sm:$0xff]  ;;  %v568_v63 = vld [vmem:[#allocation8 + $0x80] sm:$0xff] }
  0xa3   :  { %1295 = vmatprep.subr.bf16.mxu0 %v1294_v15  ;;  %v1248_v15 = vpack.c.bf16 %v154_v13, %v150_v12  ;;  %v169_v29 = vld [vmem:[#allocation5 + $0xf0] sm:$0xff]  ;;  %v174_v30 = vld [vmem:[#allocation5 + $0x118] sm:$0xff]  ;;  %v577_v8 = vld [vmem:[#allocation8 + $0xc8] sm:$0xff] }
  0xa4   :  { %1247 = vmatpush1.bf16.msra.mxu1 %v1246_v14  ;;  %v178_v31 = vld [vmem:[#allocation5 + $0x138] sm:$0x1]  ;;  %v173_v34 = vld [vmem:[#allocation5 + $0x110] sm:$0xff]  ;;  %v576_v12 = vld [vmem:[#allocation8 + $0xc0] sm:$0xff] }
  0xa5   :  { %1249 = vmatprep.subr.bf16.mxu1 %v1248_v15  ;;  %v177_v35 = vld [vmem:[#allocation5 + $0x130] sm:$0x1]  ;;  %v555_v37 = vld [vmem:[#allocation8 + $0x18] sm:$0xff]  ;;  %v581_v14 = vld [vmem:[#allocation8 + $0xe8] sm:$0xff] }
  0xa6   :  { %1297 = vmatpush1.bf16.msra.mxu0 %v1296_v20  ;;  %v1250_v20 = vpack.c.bf16 %v153_v17, %v149_v16  ;;  %v554_v41 = vld [vmem:[#allocation8 + $0x10] sm:$0xff]  ;;  %v559_v43 = vld [vmem:[#allocation8 + $0x38] sm:$0xff] }
  0xa7   :  { %1299 = vmatprep.subr.bf16.mxu0 %v1298_v21  ;;  %v1252_v21 = vpack.c.bf16 %v162_v19, %v158_v18  ;;  %v558_v47 = vld [vmem:[#allocation8 + $0x30] sm:$0xff]  ;;  %v563_v50 = vld [vmem:[#allocation8 + $0x58] sm:$0xff]  ;;  %v580_v18 = vld [vmem:[#allocation8 + $0xe0] sm:$0xff] }
  0xa8   :  { %1251 = vmatpush1.bf16.msra.mxu1 %v1250_v20  ;;  %v562_v54 = vld [vmem:[#allocation8 + $0x50] sm:$0xff]  ;;  %v571_v61 = vld [vmem:[#allocation8 + $0x98] sm:$0xff]  ;;  %v585_v20 = vld [vmem:[#allocation8 + $0x108] sm:$0xff] }
  0xa9   :  { %1253 = vmatprep.subr.bf16.mxu1 %v1252_v21  ;;  %v1340_v56 = vpack.c.bf16 %v562_v54, %v560_v53  ;;  %v566_v60 = vld [vmem:[#allocation8 + $0x70] sm:$0xff]  ;;  %v575_v4 = vld [vmem:[#allocation8 + $0xb8] sm:$0xff] }
  0xaa   :  { %1301 = vmatpush1.bf16.msra.mxu0 %v1300_v26  ;;  %v1254_v26 = vpack.c.bf16 %v161_v23, %v157_v22  ;;  %v570_v1 = vld [vmem:[#allocation8 + $0x90] sm:$0xff]  ;;  %v579_v9 = vld [vmem:[#allocation8 + $0xd8] sm:$0xff] }
  0xab   :  { %1303 = vmatprep.subr.bf16.mxu0 %v1302_v27  ;;  %v1256_v27 = vpack.c.bf16 %v170_v25, %v166_v24  ;;  %v1348_v5 = vpack.c.bf16 %v570_v1, %v568_v63  ;;  %v574_v7 = vld [vmem:[#allocation8 + $0xb0] sm:$0xff]  ;;  %v1354_v11 = vpack.c.bf16 %v579_v9, %v577_v8  ;;  %v583_v15 = vld [vmem:[#allocation8 + $0xf8] sm:$0xff]  ;;  %v584_v24 = vld [vmem:[#allocation8 + $0x100] sm:$0xff] }
  0xac   :  { %1255 = vmatpush1.bf16.msra.mxu1 %v1254_v26  ;;  %v578_v13 = vld [vmem:[#allocation8 + $0xd0] sm:$0xff]  ;;  %v1358_v17 = vpack.c.bf16 %v583_v15, %v581_v14  ;;  %v587_v21 = vld [vmem:[#allocation8 + $0x118] sm:$0xff]  ;;  %v589_v26 = vld [vmem:[#allocation8 + $0x128] sm:$0xff] }
  0xad   :  { %1257 = vmatprep.subr.bf16.mxu1 %v1256_v27  ;;  %v1356_v16 = vpack.c.bf16 %v578_v13, %v576_v12  ;;  %v582_v19 = vld [vmem:[#allocation8 + $0xf0] sm:$0xff]  ;;  %v1362_v23 = vpack.c.bf16 %v587_v21, %v585_v20  ;;  %v591_v27 = vld [vmem:[#allocation8 + $0x138] sm:$0xff] }
  0xae   :  { %1305 = vmatpush1.bf16.msra.mxu0 %v1304_v32  ;;  %v1258_v32 = vpack.c.bf16 %v169_v29, %v165_v28  ;;  %v1360_v22 = vpack.c.bf16 %v582_v19, %v580_v18  ;;  %v586_v25 = vld [vmem:[#allocation8 + $0x110] sm:$0xff]  ;;  %v1366_v29 = vpack.c.bf16 %v591_v27, %v589_v26  ;;  %v608_v19 = vld [vmem:[#allocation8 + $0x1c0] sm:$0xff] }
  0xaf   :  { %1307 = vmatprep.subr.bf16.mxu0 %v1306_v33  ;;  %v1260_v33 = vpack.c.bf16 %v178_v31, %v174_v30  ;;  %v1364_v28 = vpack.c.bf16 %v586_v25, %v584_v24  ;;  %v588_v30 = vld [vmem:[#allocation8 + $0x120] sm:$0xff]  ;;  %v590_v31 = vld [vmem:[#allocation8 + $0x130] sm:$0xff] }
  0xb0   :  { %1259 = vmatpush1.bf16.msra.mxu1 %v1258_v32  ;;  %v593_v32 = vld [vmem:[#allocation8 + $0x148] sm:$0xff]  ;;  %v610_v20 = vld [vmem:[#allocation8 + $0x1d0] sm:$0xff]  ;;  %v612_v25 = vld [vmem:[#allocation8 + $0x1e0] sm:$0xff] }
  0xb1   :  { %1262 = vmatprep.subr.msk.bf16.mxu1 %vm1956_vm2, %v1260_v33  ;;  %v595_v33 = vld [vmem:[#allocation8 + $0x158] sm:$0xff]  ;;  %v1388_v21 = vpack.c.bf16 %v610_v20, %v608_v19  ;;  %v614_v26 = vld [vmem:[#allocation8 + $0x1f0] sm:$0xff]  ;;  %v737_v20 = vld [vmem:[#allocation10 + $0xa0] sm:$0xff] }
  0xb2   :  { %1309 = vmatpush1.bf16.msra.mxu0 %v1308_v38  ;;  %v1263_v38 = vpack.c.bf16 %v177_v35, %v173_v34  ;;  %v1368_v34 = vpack.c.bf16 %v590_v31, %v588_v30  ;;  %v1370_v35 = vpack.c.bf16 %v595_v33, %v593_v32  ;;  %v1392_v27 = vpack.c.bf16 %v614_v26, %v612_v25  ;;  %v451_v31 = vld [vmem:[%s2041_s4] sm:$0x3]  ;;  %v741_v26 = vld [vmem:[#allocation10 + $0xc0] sm:$0xff] }
  0xb3   :  { %1311 = vmatprep.subr.bf16.mxu0 %v1310_v39  ;;  %v1330_v39 = vpack.c.bf16 %v555_v37, %v553_v36  ;;  %v592_v36 = vld [vmem:[#allocation8 + $0x140] sm:$0xff]  ;;  %v594_v37 = vld [vmem:[#allocation8 + $0x150] sm:$0xff] }
  0xb4   :  { %1265 = vmatpush1.bf16.msk.msra.mxu1 %vm1956_vm2, %v1263_v38  ;;  %v597_v38 = vld [vmem:[#allocation8 + $0x168] sm:$0xff] }
  0xb5   :  { %1331 = vmatprep.subr.bf16.mxu1 %v1330_v39  ;;  %v599_v39 = vld [vmem:[#allocation8 + $0x178] sm:$0xff] }
  0xb6   :  { %1313 = vmatpush1.bf16.msra.mxu0 %v1312_v44  ;;  %v1332_v44 = vpack.c.bf16 %v554_v41, %v552_v40  ;;  %v1372_v40 = vpack.c.bf16 %v594_v37, %v592_v36  ;;  %v1374_v41 = vpack.c.bf16 %v599_v39, %v597_v38  ;;  %v717_v38 = vld [vmem:[#allocation10] sm:$0xff]  ;;  %v719_v39 = vld [vmem:[#allocation10 + $0x10] sm:$0xff] }
  0xb7   :  { %1315 = vmatprep.subr.bf16.mxu0 %v1314_v45  ;;  %v1334_v45 = vpack.c.bf16 %v559_v43, %v557_v42  ;;  %1181 = vmatmul.mubr.msk.f32.vlgmr.msra.gmra.mrb[4].mxu1 %vm201_vm3, %v1964_v58  ;;  %v569_v58 = vld [vmem:[#allocation8 + $0x88] sm:$0xff]  ;;  %v596_v42 = vld [vmem:[#allocation8 + $0x160] sm:$0xff]  ;;  %v598_v43 = vld [vmem:[#allocation8 + $0x170] sm:$0xff] }
  0xb8   :  { %1333 = vmatpush1.bf16.msra.mxu1 %v1332_v44  ;;  %368 = vmatprep.mubr.f32.mxu1 %v1777_v0  ;;  %v1346_v0 = vpack.c.bf16 %v571_v61, %v569_v58  ;;  %v601_v44 = vld [vmem:[#allocation8 + $0x188] sm:$0xff]  ;;  %v1991_v58 = vld [vmem:[%s2039_s2] sm:$0xf] }
  0xb9   :  { %1335 = vmatprep.subr.bf16.mxu1 %v1334_v45  ;;  %v603_v45 = vld [vmem:[#allocation8 + $0x198] sm:$0xff] }
  0xba   :  { %1317 = vmatpush1.bf16.msra.mxu0 %v1316_v51  ;;  %v1336_v51 = vpack.c.bf16 %v558_v47, %v556_v46  ;;  %v1376_v46 = vpack.c.bf16 %v598_v43, %v596_v42  ;;  %v1378_v47 = vpack.c.bf16 %v603_v45, %v601_v44  ;;  %v724_v42 = vld [vmem:[#allocation10 + $0x38] sm:$0xff] }
  0xbb   :  { %1319 = vmatprep.subr.bf16.mxu0 %v1318_v52  ;;  %v1338_v52 = vpack.c.bf16 %v563_v50, %v561_v48  ;;  %1182 = vmatmul.mubr.msk.f32.gmra.mrb[6].mxu1 %vm201_vm3, %v1969_v2  ;;  %v600_v48 = vld [vmem:[#allocation8 + $0x180] sm:$0xff]  ;;  %v602_v50 = vld [vmem:[#allocation8 + $0x190] sm:$0xff] }
  0xbc   :  { %1337 = vmatpush1.bf16.msra.mxu1 %v1336_v51  ;;  %v605_v51 = vld [vmem:[#allocation8 + $0x1a8] sm:$0xff]  ;;  %v1380_v53 = vpack.c.bf16 %v602_v50, %v600_v48 }
  0xbd   :  { %1339 = vmatprep.subr.bf16.mxu1 %v1338_v52  ;;  %v607_v52 = vld [vmem:[#allocation8 + $0x1b8] sm:$0xff] }
  0xbe   :  { %1321 = vmatpush1.bf16.msra.mxu0 %v1320_v55  ;;  %v567_v55 = vld [vmem:[#allocation8 + $0x78] sm:$0xff]  ;;  %v1382_v54 = vpack.c.bf16 %v607_v52, %v605_v51  ;;  %v721_v52 = vld [vmem:[#allocation10 + $0x20] sm:$0xff] }
  0xbf   :  { %1323 = vmatprep.subr.bf16.mxu0 %v1322_v59  ;;  %v1342_v57 = vpack.c.bf16 %v567_v55, %v565_v49  ;;  %v564_v59 = vld [vmem:[#allocation8 + $0x60] sm:$0xff]  ;;  %v606_v55 = vld [vmem:[#allocation8 + $0x1b0] sm:$0xff] }
  0xc0   :  { %1341 = vmatpush1.bf16.msra.mxu1 %v1340_v56  ;;  %v604_v49 = vld [vmem:[#allocation8 + $0x1a0] sm:$0xff] }
  0xc1   :  { %1343 = vmatprep.subr.bf16.mxu1 %v1342_v57  ;;  %v1384_v56 = vpack.c.bf16 %v606_v55, %v604_v49  ;;  %v181_v57 = vlaneseq  ;;  %v726_v55 = vld [vmem:[#allocation10 + $0x48] sm:$0xff] }
  0xc2   :  { %1325 = vmatpush1.bf16.msra.mxu0 %v1324_v62  ;;  %v1344_v62 = vpack.c.bf16 %v566_v60, %v564_v59 }
  0xc3   :  { %1327 = vmatprep.subr.bf16.mxu0 %v1326_v3  ;;  %v573_v3 = vld [vmem:[#allocation8 + $0xa8] sm:$0xff]  ;;  %v1983_v59 = vshrl.u32 %v181_v57, 7 }
  0xc4   :  { %1345 = vmatpush1.bf16.msra.mxu1 %v1344_v62  ;;  %v1350_v2 = vpack.c.bf16 %v575_v4, %v573_v3 }
  0xc5   :  { %1347 = vmatprep.subr.bf16.mxu1 %v1346_v0  ;;  %v1986_v60 = vsub.s32 0, %v1983_v59  ;;  %v1994_v61 = vsub.s32 1, %v1983_v59 }
  0xc6   :  { %1329 = vmatpush1.bf16.msra.mxu0 %v1328_v6  ;;  %v572_v6 = vld [vmem:[#allocation8 + $0xa0] sm:$0xff] }
  0xc7   :  { %v1352_v10 = vpack.c.bf16 %v574_v7, %v572_v6  ;;  %v184_v62 = vrot.slane %v1991_v58, %v1986_v60  ;;  %v188_v0 = vrot.slane %v1991_v58, %v1994_v61  ;;  %v456_v32 = vrot.slane %v451_v31, %v1986_v60 }
  0xc8   :  { %1349 = vmatpush1.bf16.msra.mxu1 %v1348_v5  ;;  %v460_v33 = vrot.slane %v451_v31, %v1994_v61 }
  0xc9   :  { %1351 = vmatprep.subr.bf16.mxu1 %v1350_v2 }
  0xcc   :  { %1353 = vmatpush1.bf16.msra.mxu1 %v1352_v10 }
  0xcd   :  { %1355 = vmatprep.subr.bf16.mxu1 %v1354_v11 }
  0xd0   :  { %1357 = vmatpush1.bf16.msra.mxu1 %v1356_v16  ;;  %v609_v16 = vld [vmem:[#allocation8 + $0x1c8] sm:$0xff] }
  0xd1   :  { %1359 = vmatprep.subr.bf16.mxu1 %v1358_v17  ;;  %v611_v17 = vld [vmem:[#allocation8 + $0x1d8] sm:$0xff] }
  0xd2   :  { %v1386_v18 = vpack.c.bf16 %v611_v17, %v609_v16  ;;  %v738_v16 = vld [vmem:[#allocation10 + $0xa8] sm:$0xff]  ;;  %v740_v17 = vld [vmem:[#allocation10 + $0xb8] sm:$0xff] }
  0xd3   :  { %v1414_v19 = vpack.c.bf16 %v740_v17, %v738_v16  ;;  %v778_v17 = vld [vmem:[#allocation10 + $0x1e8] sm:$0xff] }
  0xd4   :  { %1361 = vmatpush1.bf16.msra.mxu1 %v1360_v22  ;;  %v613_v22 = vld [vmem:[#allocation8 + $0x1e8] sm:$0xff] }
  0xd5   :  { %1363 = vmatprep.subr.bf16.mxu1 %v1362_v23  ;;  %v615_v23 = vld [vmem:[#allocation8 + $0x1f8] sm:$0xff] }
  0xd6   :  { %v1390_v24 = vpack.c.bf16 %v615_v23, %v613_v22  ;;  %v742_v22 = vld [vmem:[#allocation10 + $0xc8] sm:$0xff]  ;;  %v744_v23 = vld [vmem:[#allocation10 + $0xd8] sm:$0xff] }
  0xd7   :  { %v1418_v25 = vpack.c.bf16 %v744_v23, %v742_v22  ;;  %v875_v23 = vld [vmem:[#allocation11 + $0x8] sm:$0xff] }
  0xd8   :  { %1365 = vmatpush1.bf16.msra.mxu1 %v1364_v28  ;;  %v718_v28 = vld [vmem:[#allocation10 + $0x8] sm:$0xff] }
  0xd9   :  { %1367 = vmatprep.subr.bf16.mxu1 %v1366_v29  ;;  %v720_v29 = vld [vmem:[#allocation10 + $0x18] sm:$0xff] }
  0xda   :  { %v1394_v30 = vpack.c.bf16 %v720_v29, %v718_v28  ;;  %v746_v28 = vld [vmem:[#allocation10 + $0xe8] sm:$0xff]  ;;  %v748_v29 = vld [vmem:[#allocation10 + $0xf8] sm:$0xff] }
  0xdb   :  { %v1422_v31 = vpack.c.bf16 %v748_v29, %v746_v28  ;;  %v879_v28 = vld [vmem:[#allocation11 + $0x28] sm:$0xff]  ;;  %v881_v29 = vld [vmem:[#allocation11 + $0x38] sm:$0xff] }
  0xdc   :  { %1369 = vmatpush1.bf16.msra.mxu1 %v1368_v34 }
  0xdd   :  { %1371 = vmatprep.subr.bf16.mxu1 %v1370_v35 }
  0xe0   :  { %1373 = vmatpush1.bf16.msra.mxu1 %v1372_v40 }
  0xe1   :  { %1375 = vmatprep.subr.bf16.mxu1 %v1374_v41  ;;  %v722_v41 = vld [vmem:[#allocation10 + $0x28] sm:$0xff] }
  0xe2   :  { %v1398_v51 = vpack.c.bf16 %v724_v42, %v722_v41  ;;  %v756_v41 = vld [vmem:[#allocation10 + $0x138] sm:$0xff] }
  0xe4   :  { %1377 = vmatpush1.bf16.msra.mxu1 %v1376_v46 }
  0xe5   :  { %1379 = vmatprep.subr.bf16.mxu1 %v1378_v47  ;;  %v1396_v47 = vpack.c.bf16 %v719_v39, %v717_v38  ;;  %v749_v38 = vld [vmem:[#allocation10 + $0x100] sm:$0xff]  ;;  %v751_v39 = vld [vmem:[#allocation10 + $0x110] sm:$0xff] }
  0xe6   :  { %v1428_v42 = vpack.c.bf16 %v751_v39, %v749_v38  ;;  %v882_v38 = vld [vmem:[#allocation11 + $0x40] sm:$0xff]  ;;  %v884_v39 = vld [vmem:[#allocation11 + $0x50] sm:$0xff] }
  0xe8   :  { %1381 = vmatpush1.bf16.msra.mxu1 %v1380_v53  ;;  %v723_v53 = vld [vmem:[#allocation10 + $0x30] sm:$0xff] }
  0xe9   :  { %1383 = vmatprep.subr.bf16.mxu1 %v1382_v54 }
  0xec   :  { %1385 = vmatpush1.bf16.msra.mxu1 %v1384_v56  ;;  %v728_v56 = vld [vmem:[#allocation10 + $0x58] sm:$0xff] }
  0xed   :  { %1387 = vmatprep.subr.bf16.mxu1 %v1386_v18 }
  0xf0   :  { %1389 = vmatpush1.bf16.msra.mxu1 %v1388_v21  ;;  %v739_v21 = vld [vmem:[#allocation10 + $0xb0] sm:$0xff] }
  0xf1   :  { %1391 = vmatprep.subr.bf16.mxu1 %v1390_v24  ;;  %v1416_v24 = vpack.c.bf16 %v739_v21, %v737_v20  ;;  %v777_v20 = vld [vmem:[#allocation10 + $0x1e0] sm:$0xff]  ;;  %v779_v21 = vld [vmem:[#allocation10 + $0x1f0] sm:$0xff] }
  0xf2   :  { %v1456_v22 = vpack.c.bf16 %v779_v21, %v777_v20  ;;  %v910_v20 = vld [vmem:[#allocation11 + $0x120] sm:$0xff]  ;;  %v912_v21 = vld [vmem:[#allocation11 + $0x130] sm:$0xff] }
  0xf4   :  { %1393 = vmatpush1.bf16.msra.mxu1 %v1392_v27  ;;  %v743_v27 = vld [vmem:[#allocation10 + $0xd0] sm:$0xff] }
  0xf5   :  { %1395 = vmatprep.subr.bf16.mxu1 %v1394_v30  ;;  %v1420_v30 = vpack.c.bf16 %v743_v27, %v741_v26  ;;  %v876_v27 = vld [vmem:[#allocation11 + $0x10] sm:$0xff] }
 0x169   :  { %v287_v63 = vpop.f32.mrb[0].mxu1 }
 0x16a   :  { %v288_v1 = vadd.f32 %v287_v63, %v184_v62  ;;  %v289_v3 = vpop.f32.mrb[1].mxu1  ;;  %v1402_v63 = vpack.c.bf16 %v728_v56, %v726_v55  ;;  %v761_v56 = vld [vmem:[#allocation10 + $0x160] sm:$0xff] }
 0x16b   :  { %v290_v4 = vadd.f32 %v289_v3, %v188_v0  ;;  %v727_v3 = vld [vmem:[#allocation10 + $0x50] sm:$0xff] }
 0x16c   :  { %v379_v5 = vmul.f32 0.2, %v288_v1  ;;  %vm375_vm5 = vcmp.gt.f32.partialorder %v288_v1, 0.0 }
 0x16d   :  { %v293_v2 = vpop.f32.mrb[2].mxu1  ;;  %vm376_vm4 = vcmp.gt.f32.partialorder %v290_v4, 0.0  ;;  %v380_v6 = vmul.f32 0.2, %v290_v4 }
 0x16e   :  { %v294_v7 = vadd.f32 %v293_v2, %v184_v62  ;;  %v295_v8 = vpop.f32.mrb[3].mxu1  ;;  %v383_v12 = vsel %vm375_vm5, %v288_v1, %v379_v5  ;;  %v1400_v62 = vpack.c.bf16 %v723_v53, %v721_v52  ;;  %v725_v1 = vld [vmem:[#allocation10 + $0x40] sm:$0xff]  ;;  %v730_v5 = vld [vmem:[#allocation10 + $0x68] sm:$0xff]  ;;  %v732_v2 = vld [vmem:[#allocation10 + $0x78] sm:$0xff] }
 0x16f   :  { %v296_v9 = vadd.f32 %v295_v8, %v188_v0  ;;  %v384_v10 = vsel %vm376_vm4, %v290_v4, %v380_v6  ;;  %v1404_v6 = vpack.c.bf16 %v727_v3, %v725_v1  ;;  %v729_v8 = vld [vmem:[#allocation10 + $0x60] sm:$0xff]  ;;  %v759_v52 = vld [vmem:[#allocation10 + $0x150] sm:$0xff]  ;;  %v762_v53 = vld [vmem:[#allocation10 + $0x168] sm:$0xff] }
 0x170   :  { %v381_v11 = vmul.f32 0.2, %v294_v7  ;;  %527 = vmatprep.mubr.f32.mxu0 %v384_v10  ;;  %vm377_vm7 = vcmp.gt.f32.partialorder %v294_v7, 0.0  ;;  %v734_v10 = vld [vmem:[#allocation10 + $0x88] sm:$0xff]  ;;  %v765_v3 = vld [vmem:[#allocation10 + $0x180] sm:$0xff] }
 0x171   :  { %v382_v13 = vmul.f32 0.2, %v296_v9  ;;  %528 = vmatmul.mubr.f32.vlgmr.msra.gmra.mrb[0].mxu0 %v383_v12  ;;  %vm378_vm6 = vcmp.gt.f32.partialorder %v296_v9, 0.0 }
 0x172   :  { %v385_v15 = vsel %vm377_vm7, %v294_v7, %v381_v11  ;;  %v1406_v7 = vpack.c.bf16 %v732_v2, %v730_v5  ;;  %v736_v11 = vld [vmem:[#allocation10 + $0x98] sm:$0xff]  ;;  %v770_v5 = vld [vmem:[#allocation10 + $0x1a8] sm:$0xff] }
 0x173   :  { %v386_v14 = vsel %vm378_vm6, %v296_v9, %v382_v13  ;;  %v731_v9 = vld [vmem:[#allocation10 + $0x70] sm:$0xff]  ;;  %v1410_v13 = vpack.c.bf16 %v736_v11, %v734_v10  ;;  %v772_v2 = vld [vmem:[#allocation10 + $0x1b8] sm:$0xff]  ;;  %v774_v11 = vld [vmem:[#allocation10 + $0x1c8] sm:$0xff] }
 0x174   :  { %533 = vmatprep.mubr.f32.mxu0 %v386_v14  ;;  %v1408_v12 = vpack.c.bf16 %v731_v9, %v729_v8  ;;  %v733_v14 = vld [vmem:[#allocation10 + $0x80] sm:$0xff]  ;;  %v771_v9 = vld [vmem:[#allocation10 + $0x1b0] sm:$0xff] }
 0x175   :  { %534 = vmatmul.mubr.f32.gmra.mrb[2].mxu0 %v385_v15  ;;  %v735_v15 = vld [vmem:[#allocation10 + $0x90] sm:$0xff]  ;;  %v769_v8 = vld [vmem:[#allocation10 + $0x1a0] sm:$0xff] }
 0x176   :  { %v1412_v18 = vpack.c.bf16 %v735_v15, %v733_v14  ;;  %v1448_v10 = vpack.c.bf16 %v771_v9, %v769_v8  ;;  %v773_v14 = vld [vmem:[#allocation10 + $0x1c0] sm:$0xff]  ;;  %v775_v15 = vld [vmem:[#allocation10 + $0x1d0] sm:$0xff] }
 0x177   :  { %v1452_v16 = vpack.c.bf16 %v775_v15, %v773_v14  ;;  %v902_v8 = vld [vmem:[#allocation11 + $0xe0] sm:$0xff]  ;;  %v904_v9 = vld [vmem:[#allocation11 + $0xf0] sm:$0xff] }
 0x178   :  { %v906_v14 = vld [vmem:[#allocation11 + $0x100] sm:$0xff]  ;;  %v908_v15 = vld [vmem:[#allocation11 + $0x110] sm:$0xff] }
 0x244   :  { %v529_v34 = vpop.f32.mrb[0].mxu0 }
 0x245   :  { %v530_v35 = vadd.f32 %v529_v34, %v456_v32  ;;  %v531_v36 = vpop.f32.mrb[1].mxu0  ;;  %v750_v34 = vld [vmem:[#allocation10 + $0x108] sm:$0xff] }
 0x246   :  { %v532_v37 = vadd.f32 %v531_v36, %v460_v33 }
 0x247   :  { %v544_v40 = vmul.f32 0.2, %v530_v35  ;;  %vm540_vm8 = vcmp.gt.f32.partialorder %v530_v35, 0.0 }
 0x248   :  { %v545_v43 = vmul.f32 0.2, %v532_v37  ;;  %v535_v44 = vpop.f32.mrb[2].mxu0  ;;  %vm541_vm9 = vcmp.gt.f32.partialorder %v532_v37, 0.0 }
 0x249   :  { %v536_v45 = vadd.f32 %v535_v44, %v456_v32  ;;  %v537_v46 = vpop.f32.mrb[3].mxu0  ;;  %v548_v54 = vsel %vm540_vm8, %v530_v35, %v544_v40  ;;  %v745_v32 = vld [vmem:[#allocation10 + $0xe0] sm:$0xff]  ;;  %v752_v35 = vld [vmem:[#allocation10 + $0x118] sm:$0xff]  ;;  %v754_v40 = vld [vmem:[#allocation10 + $0x128] sm:$0xff] }
 0x24a   :  { %v538_v48 = vadd.f32 %v537_v46, %v460_v33  ;;  %v549_v50 = vsel %vm541_vm9, %v532_v37, %v545_v43  ;;  %v747_v33 = vld [vmem:[#allocation10 + $0xf0] sm:$0xff]  ;;  %v1426_v37 = vpack.c.bf16 %v752_v35, %v750_v34  ;;  %v1430_v43 = vpack.c.bf16 %v756_v41, %v754_v40  ;;  %v753_v44 = vld [vmem:[#allocation10 + $0x120] sm:$0xff]  ;;  %v758_v46 = vld [vmem:[#allocation10 + $0x148] sm:$0xff] }
 0x24b   :  { %v546_v49 = vmul.f32 0.2, %v536_v45  ;;  %692 = vmatprep.mubr.f32.mxu1 %v549_v50  ;;  %vm542_vm11 = vcmp.gt.f32.partialorder %v536_v45, 0.0  ;;  %v1424_v36 = vpack.c.bf16 %v747_v33, %v745_v32  ;;  %v878_v32 = vld [vmem:[#allocation11 + $0x20] sm:$0xff]  ;;  %v880_v33 = vld [vmem:[#allocation11 + $0x30] sm:$0xff]  ;;  %v883_v34 = vld [vmem:[#allocation11 + $0x48] sm:$0xff] }
 0x24c   :  { %v547_v57 = vmul.f32 0.2, %v538_v48  ;;  %693 = vmatmul.mubr.f32.vlgmr.msra.gmra.mrb[8].mxu1 %v548_v54  ;;  %vm543_vm10 = vcmp.gt.f32.partialorder %v538_v48, 0.0  ;;  %v764_v54 = vld [vmem:[#allocation10 + $0x178] sm:$0xff]  ;;  %v887_v40 = vld [vmem:[#allocation11 + $0x68] sm:$0xff] }
 0x24d   :  { %1397 = vmatpush1.bf16.msra.mxu1 %v1396_v47  ;;  %v550_v4 = vsel %vm542_vm11, %v536_v45, %v546_v49  ;;  %v755_v45 = vld [vmem:[#allocation10 + $0x130] sm:$0xff]  ;;  %v760_v47 = vld [vmem:[#allocation10 + $0x158] sm:$0xff]  ;;  %v1438_v55 = vpack.c.bf16 %v764_v54, %v762_v53  ;;  %v895_v53 = vld [vmem:[#allocation11 + $0xa8] sm:$0xff] }
 0x24e   :  { %v551_v0 = vsel %vm543_vm10, %v538_v48, %v547_v57  ;;  %1399 = vmatprep.subr.bf16.mxu1 %v1398_v51  ;;  %v1432_v48 = vpack.c.bf16 %v755_v45, %v753_v44  ;;  %v1434_v50 = vpack.c.bf16 %v760_v47, %v758_v46  ;;  %v757_v51 = vld [vmem:[#allocation10 + $0x140] sm:$0xff]  ;;  %v763_v57 = vld [vmem:[#allocation10 + $0x170] sm:$0xff]  ;;  %v885_v35 = vld [vmem:[#allocation11 + $0x58] sm:$0xff] }
 0x24f   :  { %698 = vmatprep.mubr.f32.mxu1 %v551_v0  ;;  %v1436_v49 = vpack.c.bf16 %v759_v52, %v757_v51  ;;  %v768_v0 = vld [vmem:[#allocation10 + $0x198] sm:$0xff]  ;;  %v886_v44 = vld [vmem:[#allocation11 + $0x60] sm:$0xff]  ;;  %v888_v45 = vld [vmem:[#allocation11 + $0x70] sm:$0xff] }
 0x250   :  { %699 = vmatmul.mubr.f32.gmra.mrb[10].mxu1 %v550_v4  ;;  %v767_v4 = vld [vmem:[#allocation10 + $0x190] sm:$0xff]  ;;  %v889_v41 = vld [vmem:[#allocation11 + $0x78] sm:$0xff]  ;;  %v891_v46 = vld [vmem:[#allocation11 + $0x88] sm:$0xff] }
 0x251   :  { %1401 = vmatpush1.bf16.msra.mxu1 %v1400_v62  ;;  %v766_v62 = vld [vmem:[#allocation10 + $0x188] sm:$0xff]  ;;  %v893_v47 = vld [vmem:[#allocation11 + $0x98] sm:$0xff]  ;;  %v890_v51 = vld [vmem:[#allocation11 + $0x80] sm:$0xff] }
 0x252   :  { %1403 = vmatprep.subr.bf16.mxu1 %v1402_v63  ;;  %v1440_v63 = vpack.c.bf16 %v763_v57, %v761_v56  ;;  %v1442_v1 = vpack.c.bf16 %v768_v0, %v766_v62  ;;  %v892_v52 = vld [vmem:[#allocation11 + $0x90] sm:$0xff]  ;;  %v897_v54 = vld [vmem:[#allocation11 + $0xb8] sm:$0xff]  ;;  %v894_v56 = vld [vmem:[#allocation11 + $0xa0] sm:$0xff] }
 0x253   :  { %v896_v57 = vld [vmem:[#allocation11 + $0xb0] sm:$0xff]  ;;  %v899_v62 = vld [vmem:[#allocation11 + $0xc8] sm:$0xff]  ;;  %v901_v0 = vld [vmem:[#allocation11 + $0xd8] sm:$0xff] }
 0x255   :  { %1405 = vmatpush1.bf16.msra.mxu1 %v1404_v6  ;;  %v1444_v6 = vpack.c.bf16 %v767_v4, %v765_v3  ;;  %v898_v3 = vld [vmem:[#allocation11 + $0xc0] sm:$0xff]  ;;  %v900_v4 = vld [vmem:[#allocation11 + $0xd0] sm:$0xff] }
 0x256   :  { %1407 = vmatprep.subr.bf16.mxu1 %v1406_v7  ;;  %v1446_v7 = vpack.c.bf16 %v772_v2, %v770_v5  ;;  %v903_v5 = vld [vmem:[#allocation11 + $0xe8] sm:$0xff]  ;;  %v905_v2 = vld [vmem:[#allocation11 + $0xf8] sm:$0xff] }
 0x259   :  { %1409 = vmatpush1.bf16.msra.mxu1 %v1408_v12  ;;  %v776_v12 = vld [vmem:[#allocation10 + $0x1d8] sm:$0xff] }
 0x25a   :  { %1411 = vmatprep.subr.bf16.mxu1 %v1410_v13  ;;  %v1450_v13 = vpack.c.bf16 %v776_v12, %v774_v11  ;;  %v909_v11 = vld [vmem:[#allocation11 + $0x118] sm:$0xff]  ;;  %v1488_v12 = vpack.c.bf16 %v904_v9, %v902_v8  ;;  %v930_v9 = vld [vmem:[#allocation11 + $0x1c0] sm:$0xff] }
 0x25d   :  { %1413 = vmatpush1.bf16.msra.mxu1 %v1412_v18  ;;  %v780_v18 = vld [vmem:[#allocation10 + $0x1f8] sm:$0xff] }
 0x25e   :  { %1415 = vmatprep.subr.bf16.mxu1 %v1414_v19  ;;  %v1454_v19 = vpack.c.bf16 %v780_v18, %v778_v17  ;;  %v913_v17 = vld [vmem:[#allocation11 + $0x138] sm:$0xff]  ;;  %v1492_v18 = vpack.c.bf16 %v908_v15, %v906_v14  ;;  %v934_v15 = vld [vmem:[#allocation11 + $0x1e0] sm:$0xff] }
 0x261   :  { %1417 = vmatpush1.bf16.msra.mxu1 %v1416_v24  ;;  %v877_v24 = vld [vmem:[#allocation11 + $0x18] sm:$0xff] }
 0x262   :  { %1419 = vmatprep.subr.bf16.mxu1 %v1418_v25  ;;  %v874_v25 = vld [vmem:[#allocation11] sm:$0xff]  ;;  %v1458_v26 = vpack.c.bf16 %v877_v24, %v875_v23  ;;  %v917_v23 = vld [vmem:[#allocation11 + $0x158] sm:$0xff]  ;;  %v1496_v24 = vpack.c.bf16 %v912_v21, %v910_v20  ;;  %v191_v21 = vsub.s32 2, %v1983_v59 }
 0x264   :  { %1459 = vmatprep.subr.bf16.mxu0 %v1458_v26  ;;  %v914_v26 = vld [vmem:[#allocation11 + $0x140] sm:$0xff] }
 0x265   :  { %1421 = vmatpush1.bf16.msra.mxu1 %v1420_v30  ;;  %v1460_v30 = vpack.c.bf16 %v876_v27, %v874_v25  ;;  %v916_v27 = vld [vmem:[#allocation11 + $0x150] sm:$0xff] }
 0x266   :  { %1423 = vmatprep.subr.bf16.mxu1 %v1422_v31  ;;  %v1462_v31 = vpack.c.bf16 %v881_v29, %v879_v28  ;;  %v919_v28 = vld [vmem:[#allocation11 + $0x168] sm:$0xff]  ;;  %v921_v29 = vld [vmem:[#allocation11 + $0x178] sm:$0xff] }
 0x267   :  { %1461 = vmatpush1.bf16.msra.mxu0 %v1460_v30  ;;  %v1500_v30 = vpack.c.bf16 %v916_v27, %v914_v26 }
 0x268   :  { %1463 = vmatprep.subr.bf16.mxu0 %v1462_v31  ;;  %v1502_v31 = vpack.c.bf16 %v921_v29, %v919_v28  ;;  %v1039_v29 = vld [vmem:[#allocation13] sm:$0xff] }
 0x269   :  { %1425 = vmatpush1.bf16.msra.mxu1 %v1424_v36  ;;  %v1464_v36 = vpack.c.bf16 %v880_v33, %v878_v32  ;;  %v918_v32 = vld [vmem:[#allocation11 + $0x160] sm:$0xff]  ;;  %v920_v33 = vld [vmem:[#allocation11 + $0x170] sm:$0xff] }
 0x26a   :  { %1427 = vmatprep.subr.bf16.mxu1 %v1426_v37  ;;  %v1466_v37 = vpack.c.bf16 %v885_v35, %v883_v34  ;;  %v923_v34 = vld [vmem:[#allocation11 + $0x188] sm:$0xff]  ;;  %v925_v35 = vld [vmem:[#allocation11 + $0x198] sm:$0xff] }
 0x26b   :  { %1465 = vmatpush1.bf16.msra.mxu0 %v1464_v36  ;;  %v1504_v36 = vpack.c.bf16 %v920_v33, %v918_v32  ;;  %v1057_v32 = vld [vmem:[#allocation13 + $0x90] sm:$0xff]  ;;  %v1058_v33 = vld [vmem:[#allocation13 + $0x98] sm:$0xff] }
 0x26c   :  { %1467 = vmatprep.subr.bf16.mxu0 %v1466_v37  ;;  %v1506_v37 = vpack.c.bf16 %v925_v35, %v923_v34 }
 0x26d   :  { %1429 = vmatpush1.bf16.msra.mxu1 %v1428_v42  ;;  %v1468_v42 = vpack.c.bf16 %v884_v39, %v882_v38  ;;  %v922_v38 = vld [vmem:[#allocation11 + $0x180] sm:$0xff]  ;;  %v924_v39 = vld [vmem:[#allocation11 + $0x190] sm:$0xff] }
 0x26e   :  { %1431 = vmatprep.subr.bf16.mxu1 %v1430_v43  ;;  %v1470_v43 = vpack.c.bf16 %v889_v41, %v887_v40  ;;  %v927_v40 = vld [vmem:[#allocation11 + $0x1a8] sm:$0xff]  ;;  %v929_v41 = vld [vmem:[#allocation11 + $0x1b8] sm:$0xff] }
 0x26f   :  { %1469 = vmatpush1.bf16.msra.mxu0 %v1468_v42  ;;  %v1508_v42 = vpack.c.bf16 %v924_v39, %v922_v38 }
 0x270   :  { %1471 = vmatprep.subr.bf16.mxu0 %v1470_v43  ;;  %v1510_v43 = vpack.c.bf16 %v929_v41, %v927_v40  ;;  %v1526_v40 = vpack.c.bf16 %v1058_v33, %v1057_v32  ;;  %v1042_v41 = vld [vmem:[#allocation13 + $0x18] sm:$0xff] }
 0x271   :  { %1433 = vmatpush1.bf16.msra.mxu1 %v1432_v48  ;;  %v1472_v48 = vpack.c.bf16 %v888_v45, %v886_v44  ;;  %v926_v44 = vld [vmem:[#allocation11 + $0x1a0] sm:$0xff]  ;;  %v928_v45 = vld [vmem:[#allocation11 + $0x1b0] sm:$0xff] }
 0x272   :  { %1435 = vmatprep.subr.bf16.mxu1 %v1434_v50  ;;  %v1474_v50 = vpack.c.bf16 %v893_v47, %v891_v46  ;;  %v1512_v46 = vpack.c.bf16 %v928_v45, %v926_v44  ;;  %v616_v47 = vld [vmem:[%s2043_s6] sm:$0x3]  ;;  %v1059_v44 = vld [vmem:[#allocation13 + $0xa0] sm:$0xff]  ;;  %v1060_v45 = vld [vmem:[#allocation13 + $0xa8] sm:$0xff] }
 0x273   :  { %1473 = vmatpush1.bf16.msra.mxu0 %v1472_v48  ;;  %v621_v48 = vrot.slane %v616_v47, %v1986_v60 }
 0x274   :  { %1475 = vmatprep.subr.bf16.mxu0 %v1474_v50  ;;  %v625_v50 = vrot.slane %v616_v47, %v1994_v61 }
 0x275   :  { %1437 = vmatpush1.bf16.msra.mxu1 %v1436_v49  ;;  %v1476_v49 = vpack.c.bf16 %v892_v52, %v890_v51 }
 0x276   :  { %1439 = vmatprep.subr.bf16.mxu1 %v1438_v55  ;;  %v1478_v55 = vpack.c.bf16 %v897_v54, %v895_v53 }
 0x277   :  { %1477 = vmatpush1.bf16.msra.mxu0 %v1476_v49 }
 0x278   :  { %1479 = vmatprep.subr.bf16.mxu0 %v1478_v55 }
 0x279   :  { %1441 = vmatpush1.bf16.msra.mxu1 %v1440_v63  ;;  %v1480_v63 = vpack.c.bf16 %v896_v57, %v894_v56 }
 0x27a   :  { %1443 = vmatprep.subr.bf16.mxu1 %v1442_v1  ;;  %v1482_v1 = vpack.c.bf16 %v901_v0, %v899_v62 }
 0x27b   :  { %1481 = vmatpush1.bf16.msra.mxu0 %v1480_v63 }
 0x27c   :  { %1483 = vmatprep.subr.bf16.mxu0 %v1482_v1 }
 0x27d   :  { %1445 = vmatpush1.bf16.msra.mxu1 %v1444_v6  ;;  %v1484_v6 = vpack.c.bf16 %v900_v4, %v898_v3 }
 0x27e   :  { %1447 = vmatprep.subr.bf16.mxu1 %v1446_v7  ;;  %v1486_v7 = vpack.c.bf16 %v905_v2, %v903_v5 }
 0x27f   :  { %1485 = vmatpush1.bf16.msra.mxu0 %v1484_v6  ;;  %v931_v6 = vld [vmem:[#allocation11 + $0x1c8] sm:$0xff] }
 0x280   :  { %1487 = vmatprep.subr.bf16.mxu0 %v1486_v7  ;;  %v933_v7 = vld [vmem:[#allocation11 + $0x1d8] sm:$0xff] }
 0x281   :  { %1449 = vmatpush1.bf16.msra.mxu1 %v1448_v10  ;;  %v907_v10 = vld [vmem:[#allocation11 + $0x108] sm:$0xff]  ;;  %v1514_v8 = vpack.c.bf16 %v933_v7, %v931_v6  ;;  %v1066_v6 = vld [vmem:[#allocation13 + $0xd8] sm:$0xff] }
 0x282   :  { %1451 = vmatprep.subr.bf16.mxu1 %v1450_v13  ;;  %v1490_v13 = vpack.c.bf16 %v909_v11, %v907_v10  ;;  %v932_v10 = vld [vmem:[#allocation11 + $0x1d0] sm:$0xff] }
 0x283   :  { %1489 = vmatpush1.bf16.msra.mxu0 %v1488_v12  ;;  %v1516_v11 = vpack.c.bf16 %v932_v10, %v930_v9  ;;  %v935_v12 = vld [vmem:[#allocation11 + $0x1e8] sm:$0xff]  ;;  %v1049_v9 = vld [vmem:[#allocation13 + $0x50] sm:$0xff]  ;;  %v1050_v10 = vld [vmem:[#allocation13 + $0x58] sm:$0xff] }
 0x284   :  { %1491 = vmatprep.subr.bf16.mxu0 %v1490_v13  ;;  %v937_v13 = vld [vmem:[#allocation11 + $0x1f8] sm:$0xff] }
 0x285   :  { %1453 = vmatpush1.bf16.msra.mxu1 %v1452_v16  ;;  %v911_v16 = vld [vmem:[#allocation11 + $0x128] sm:$0xff]  ;;  %v1518_v14 = vpack.c.bf16 %v937_v13, %v935_v12  ;;  %v1067_v12 = vld [vmem:[#allocation13 + $0xe0] sm:$0xff] }
 0x286   :  { %1455 = vmatprep.subr.bf16.mxu1 %v1454_v19  ;;  %v1494_v19 = vpack.c.bf16 %v913_v17, %v911_v16  ;;  %v936_v16 = vld [vmem:[#allocation11 + $0x1f0] sm:$0xff]  ;;  %v1068_v13 = vld [vmem:[#allocation13 + $0xe8] sm:$0xff] }
 0x287   :  { %1493 = vmatpush1.bf16.msra.mxu0 %v1492_v18  ;;  %v1520_v17 = vpack.c.bf16 %v936_v16, %v934_v15  ;;  %v1055_v18 = vld [vmem:[#allocation13 + $0x80] sm:$0xff]  ;;  %v1052_v16 = vld [vmem:[#allocation13 + $0x68] sm:$0xff] }
 0x288   :  { %1495 = vmatprep.subr.bf16.mxu0 %v1494_v19  ;;  %v1056_v19 = vld [vmem:[#allocation13 + $0x88] sm:$0xff]  ;;  %v1051_v15 = vld [vmem:[#allocation13 + $0x60] sm:$0xff] }
 0x289   :  { %1457 = vmatpush1.bf16.msra.mxu1 %v1456_v22  ;;  %v915_v22 = vld [vmem:[#allocation11 + $0x148] sm:$0xff]  ;;  %v1522_v20 = vpack.c.bf16 %v1056_v19, %v1055_v18  ;;  %v1069_v18 = vld [vmem:[#allocation13 + $0xf0] sm:$0xff]  ;;  %v1070_v19 = vld [vmem:[#allocation13 + $0xf8] sm:$0xff] }
 0x28a   :  { %v1498_v25 = vpack.c.bf16 %v917_v23, %v915_v22  ;;  %v195_v22 = vsub.s32 3, %v1983_v59  ;;  %v192_v23 = vrot.slane %v1991_v58, %v191_v21  ;;  %v1053_v21 = vld [vmem:[#allocation13 + $0x70] sm:$0xff] }
 0x28b   :  { %1497 = vmatpush1.bf16.msra.mxu0 %v1496_v24 }
 0x28c   :  { %1499 = vmatprep.subr.bf16.mxu0 %v1498_v25  ;;  %v196_v24 = vrot.slane %v1991_v58, %v195_v22  ;;  %v1041_v58 = vld [vmem:[#allocation13 + $0x10] sm:$0xff]  ;;  %v1054_v22 = vld [vmem:[#allocation13 + $0x78] sm:$0xff] }
 0x28d   :  { %v1528_v47 = vpack.c.bf16 %v1042_v41, %v1041_v58  ;;  %v1183_v58 = vld [vmem:[%s2048_s11] ss:$0 sm:$0xff] }
 0x28f   :  { %1501 = vmatpush1.bf16.msra.mxu0 %v1500_v30  ;;  %v1040_v30 = vld [vmem:[#allocation13 + $0x8] sm:$0xff] }
 0x290   :  { %1503 = vmatprep.subr.bf16.mxu0 %v1502_v31  ;;  %v1524_v59 = vpack.c.bf16 %v1040_v30, %v1039_v29 }
 0x293   :  { %1505 = vmatpush1.bf16.msra.mxu0 %v1504_v36 }
 0x294   :  { %1507 = vmatprep.subr.bf16.mxu0 %v1506_v37 }
 0x297   :  { %1509 = vmatpush1.bf16.msra.mxu0 %v1508_v42 }
 0x298   :  { %1511 = vmatprep.subr.bf16.mxu0 %v1510_v43 }
 0x29b   :  { %1513 = vmatpush1.bf16.msra.mxu0 %v1512_v46 }
 0x29c   :  { %1515 = vmatprep.subr.bf16.mxu0 %v1514_v8 }
 0x29f   :  { %1517 = vmatpush1.bf16.msra.mxu0 %v1516_v11  ;;  %v1544_v11 = vpack.c.bf16 %v1050_v10, %v1049_v9 }
 0x2a0   :  { %1519 = vmatprep.subr.bf16.mxu0 %v1518_v14  ;;  %v1546_v14 = vpack.c.bf16 %v1068_v13, %v1067_v12 }
 0x2a3   :  { %1521 = vmatpush1.bf16.msra.mxu0 %v1520_v17  ;;  %v1548_v17 = vpack.c.bf16 %v1052_v16, %v1051_v15 }
 0x2a4   :  { %1523 = vmatprep.subr.bf16.mxu0 %v1522_v20  ;;  %v1550_v20 = vpack.c.bf16 %v1070_v19, %v1069_v18 }
 0x31f   :  { %v694_v51 = vpop.f32.mrb[8].mxu1 }
 0x320   :  { %v695_v52 = vadd.f32 %v694_v51, %v621_v48  ;;  %v696_v53 = vpop.f32.mrb[9].mxu1  ;;  %v1043_v51 = vld [vmem:[#allocation13 + $0x20] sm:$0xff] }
 0x321   :  { %v697_v54 = vadd.f32 %v696_v53, %v625_v50 }
 0x322   :  { %v709_v49 = vmul.f32 0.2, %v695_v52  ;;  %vm705_vm12 = vcmp.gt.f32.partialorder %v695_v52, 0.0 }
 0x323   :  { %v710_v55 = vmul.f32 0.2, %v697_v54  ;;  %v700_v56 = vpop.f32.mrb[10].mxu1  ;;  %vm706_vm13 = vcmp.gt.f32.partialorder %v697_v54, 0.0 }
 0x324   :  { %v701_v57 = vadd.f32 %v700_v56, %v621_v48  ;;  %v702_v62 = vpop.f32.mrb[11].mxu1  ;;  %v713_v1 = vsel %vm705_vm12, %v695_v52, %v709_v49  ;;  %v1044_v52 = vld [vmem:[#allocation13 + $0x28] sm:$0xff]  ;;  %v1062_v49 = vld [vmem:[#allocation13 + $0xb8] sm:$0xff] }
 0x325   :  { %v703_v0 = vadd.f32 %v702_v62, %v625_v50  ;;  %v714_v63 = vsel %vm706_vm13, %v697_v54, %v710_v55  ;;  %v1530_v50 = vpack.c.bf16 %v1060_v45, %v1059_v44  ;;  %v1061_v54 = vld [vmem:[#allocation13 + $0xb0] sm:$0xff]  ;;  %v1532_v55 = vpack.c.bf16 %v1044_v52, %v1043_v51  ;;  %v1046_v62 = vld [vmem:[#allocation13 + $0x38] sm:$0xff] }
 0x326   :  { %v711_v3 = vmul.f32 0.2, %v701_v57  ;;  %845 = vmatprep.mubr.f32.mxu1 %v714_v63  ;;  %vm707_vm15 = vcmp.gt.f32.partialorder %v701_v57, 0.0  ;;  %v1534_v56 = vpack.c.bf16 %v1062_v49, %v1061_v54  ;;  %v1064_v63 = vld [vmem:[#allocation13 + $0xc8] sm:$0xff] }
 0x327   :  { %v712_v4 = vmul.f32 0.2, %v703_v0  ;;  %846 = vmatmul.mubr.f32.vlgmr.msra.gmra.mrb[4].mxu1 %v713_v1  ;;  %vm708_vm14 = vcmp.gt.f32.partialorder %v703_v0, 0.0 }
 0x328   :  { %v715_v2 = vsel %vm707_vm15, %v701_v57, %v711_v3  ;;  %v1045_v57 = vld [vmem:[#allocation13 + $0x30] sm:$0xff] }
 0x329   :  { %v716_v5 = vsel %vm708_vm14, %v703_v0, %v712_v4  ;;  %v1063_v0 = vld [vmem:[#allocation13 + $0xc0] sm:$0xff]  ;;  %v1536_v1 = vpack.c.bf16 %v1046_v62, %v1045_v57 }
 0x32a   :  { %851 = vmatprep.mubr.f32.mxu1 %v716_v5  ;;  %v1538_v3 = vpack.c.bf16 %v1064_v63, %v1063_v0  ;;  %v1047_v4 = vld [vmem:[#allocation13 + $0x40] sm:$0xff]  ;;  %v1048_v5 = vld [vmem:[#allocation13 + $0x48] sm:$0xff] }
 0x32b   :  { %852 = vmatmul.mubr.f32.gmra.mrb[6].mxu1 %v715_v2  ;;  %v1065_v2 = vld [vmem:[#allocation13 + $0xd0] sm:$0xff]  ;;  %v1540_v7 = vpack.c.bf16 %v1048_v5, %v1047_v4 }
 0x32c   :  { %v1542_v8 = vpack.c.bf16 %v1066_v6, %v1065_v2 }
 0x3fa   :  { %v847_v25 = vpop.f32.mrb[4].mxu1 }
 0x3fb   :  { %v1554_v26 = vadd.f32 %v847_v25, %v192_v23  ;;  %v849_v27 = vpop.f32.mrb[5].mxu1 }
 0x3fc   :  { %v1555_v28 = vadd.f32 %v849_v27, %v196_v24 }
 0x3fd   :  { %v866_v31 = vmul.f32 0.2, %v1554_v26  ;;  %vm862_vm0 = vcmp.gt.f32.partialorder %v1554_v26, 0.0 }
 0x3fe   :  { %v867_v34 = vmul.f32 0.2, %v1555_v28  ;;  %v853_v35 = vpop.f32.mrb[6].mxu1  ;;  %vm863_vm1 = vcmp.gt.f32.partialorder %v1555_v28, 0.0 }
 0x3ff   :  { %v1556_v36 = vadd.f32 %v853_v35, %v192_v23  ;;  %v855_v37 = vpop.f32.mrb[7].mxu1  ;;  %v870_v42 = vsel %vm862_vm0, %v1554_v26, %v866_v31  ;;  %v1552_v23 = vpack.c.bf16 %v1054_v22, %v1053_v21 }
 0x400   :  { %v1557_v38 = vadd.f32 %v855_v37, %v196_v24  ;;  %v871_v39 = vsel %vm863_vm1, %v1555_v28, %v867_v34  ;;  %v938_v24 = vld [vmem:[%s2046_s9] sm:$0x3] }
 0x401   :  { %v868_v43 = vmul.f32 0.2, %v1556_v36  ;;  %1014 = vmatprep.mubr.f32.mxu0 %v871_v39  ;;  %vm864_vm3 = vcmp.gt.f32.partialorder %v1556_v36, 0.0  ;;  %v943_v25 = vrot.slane %v938_v24, %v1986_v60  ;;  %v947_v26 = vrot.slane %v938_v24, %v1994_v61 }
 0x402   :  { %v869_v46 = vmul.f32 0.2, %v1557_v38  ;;  %1015 = vmatmul.mubr.f32.vlgmr.msra.gmra.mrb[4].mxu0 %v870_v42  ;;  %vm865_vm2 = vcmp.gt.f32.partialorder %v1557_v38, 0.0 }
 0x403   :  { %1525 = vmatpush3.bf16.msra.mxu0 %v1524_v59  ;;  %v872_v53 = vsel %vm864_vm3, %v1556_v36, %v868_v43 }
 0x404   :  { %v873_v48 = vsel %vm865_vm2, %v1557_v38, %v869_v46  ;;  %1527 = vmatprep.subr.bf16.mxu0 %v1526_v40 }
 0x405   :  { %1020 = vmatprep.mubr.f32.mxu0 %v873_v48 }
 0x406   :  { %1021 = vmatmul.mubr.f32.gmra.mrb[6].mxu0 %v872_v53 }
 0x407   :  { %1529 = vmatpush3.bf16.msra.mxu0 %v1528_v47 }
 0x408   :  { %1531 = vmatprep.subr.bf16.mxu0 %v1530_v50 }
 0x40b   :  { %1533 = vmatpush3.bf16.msra.mxu0 %v1532_v55 }
 0x40c   :  { %1535 = vmatprep.subr.bf16.mxu0 %v1534_v56 }
 0x40f   :  { %1537 = vmatpush3.bf16.msra.mxu0 %v1536_v1 }
 0x410   :  { %1539 = vmatprep.subr.bf16.mxu0 %v1538_v3 }
 0x413   :  { %1541 = vmatpush3.bf16.msra.mxu0 %v1540_v7 }
 0x414   :  { %1543 = vmatprep.subr.bf16.mxu0 %v1542_v8 }
 0x417   :  { %1545 = vmatpush3.bf16.msra.mxu0 %v1544_v11 }
 0x418   :  { %1547 = vmatprep.subr.bf16.mxu0 %v1546_v14 }
 0x41b   :  { %1549 = vmatpush3.bf16.msra.mxu0 %v1548_v17 }
 0x41c   :  { %1551 = vmatprep.subr.bf16.mxu0 %v1550_v20 }
 0x41f   :  { %1553 = vmatpush3.bf16.msra.mxu0 %v1552_v23 }
 0x4d5   :  { %v1016_v27 = vpop.f32.mrb[4].mxu0 }
 0x4d6   :  { %v1017_v28 = vadd.f32 %v1016_v27, %v943_v25  ;;  %v1018_v29 = vpop.f32.mrb[5].mxu0 }
 0x4d7   :  { %v1019_v30 = vadd.f32 %v1018_v29, %v947_v26 }
 0x4d8   :  { %v1031_v31 = vmul.f32 0.2, %v1017_v28  ;;  %vm1027_vm4 = vcmp.gt.f32.partialorder %v1017_v28, 0.0 }
 0x4d9   :  { %v1032_v32 = vmul.f32 0.2, %v1019_v30  ;;  %v1022_v33 = vpop.f32.mrb[6].mxu0  ;;  %vm1028_vm5 = vcmp.gt.f32.partialorder %v1019_v30, 0.0 }
 0x4da   :  { %v1023_v34 = vadd.f32 %v1022_v33, %v943_v25  ;;  %v1024_v35 = vpop.f32.mrb[7].mxu0  ;;  %v1035_v59 = vsel %vm1027_vm4, %v1017_v28, %v1031_v31 }
 0x4db   :  { %v1025_v36 = vadd.f32 %v1024_v35, %v947_v26  ;;  %v1036_v37 = vsel %vm1028_vm5, %v1019_v30, %v1032_v32 }
 0x4dc   :  { %v1033_v38 = vmul.f32 0.2, %v1023_v34  ;;  %1142 = vmatprep.mubr.f32.mxu0 %v1036_v37  ;;  %vm1029_vm7 = vcmp.gt.f32.partialorder %v1023_v34, 0.0 }
 0x4dd   :  { %v1034_v39 = vmul.f32 0.2, %v1025_v36  ;;  %1143 = vmatmul.mubr.f32.vlgmr.msra.gmra.mrb[8].mxu0 %v1035_v59  ;;  %vm1030_vm6 = vcmp.gt.f32.partialorder %v1025_v36, 0.0 }
 0x4de   :  { %v1037_v61 = vsel %vm1029_vm7, %v1023_v34, %v1033_v38 }
 0x4df   :  { %v1038_v60 = vsel %vm1030_vm6, %v1025_v36, %v1034_v39 }
 0x4e0   :  { %1147 = vmatprep.mubr.f32.mxu0 %v1038_v60 }
 0x4e1   :  { %1148 = vmatmul.mubr.f32.gmra.mrb[10].mxu0 %v1037_v61 }
 0x5b0   :  { %v1216_v40 = vpop.f32.mrb[8].mxu0 }
 0x5b1   :  { %v1217_v41 = vpop.f32.mrb[9].mxu0 }
 0x5b2   :  { %v1218_v42 = vadd.f32 %v1217_v41, %v1216_v40 }
 0x5b4   :  { %v1145_v43 = vadd.f32 %v1218_v42, %v1183_v58  ;;  %v1219_v44 = vpop.f32.mrb[10].mxu0 }
 0x5b5   :  { %v1220_v45 = vpop.f32.mrb[11].mxu0 }
 0x5b6   :  { %1153 = vst [vmem:[#allocation14] sm:$0xff] %v1145_v43  ;;  %v1221_v46 = vadd.f32 %v1220_v45, %v1219_v44 }
 0x5b8   :  { %v1150_v47 = vadd.f32 %v1221_v46, %v1183_v58 }
 0x5ba   :  { %1154 = vst [vmem:[#allocation14 + $0x8] sm:$0xff] %v1150_v47 }
 0x5bb   :  { %1743 = shalt.err (!%p1740_p4)
}
 0x5bc   :  { %s1744_s23 = scalar_lea.hbm %s2049_s12, 256 }
 0x5bd   :  { %p1745_p5 = scmp.ne.s32.totalorder %s2049_s12, %s1744_s23  ;;  %p1748_p6 = scmp.lt.u32.totalorder %s1744_s23, %s2049_s12 }
 0x5bf   :  { %p1750_p7 = pnand %p1748_p6, %p1745_p5 }
 0x5c1   :  { %1753 = shalt.err (!%p1750_p7)
}
 0x5c2   :  { %1166 = dma.vmem_to_hbm [thread:$0]  %s1161_s18, 256, %s2049_s12, [#allocation4], %s1772_s8, %s1772_s8, %s1773_s20  }
 0x5c3   :  { %1762 = dma.done.wait [#allocation4], 256  }
 0x5c4   :  { %1763 = vsyncadd [#allocation4], 4294967040 }
 0x5c5   :  { %1170 = vsyncpa [#allocation3], 1 }
 0x5c6   :  { %1171 = vsyncpa [#allocation6], 1 }
 0x5c7   :  { %1172 = vsyncpa [#allocation9], 1 }
 0x5c8   :  { %1173 = vsyncpa [#allocation12], 1 }
 0x5c9   :  { %1174 = vsyncpa [#allocation4], 1 }

</bundles_post_ra>
